<compile_context>
chip_gen: v7x
topology: tpu7x:2x2x1
jax: 0.10.0
libtpu: 0.0.40
codegen_flags: <defaults>
</compile_context>

<pallas_src>
import functools

import jax
import jax.numpy as jnp
from jax.experimental import pallas as pl
from jax.experimental.pallas import tpu as pltpu


def _round_up(x, m):
    return (x + m - 1) // m * m


# ----------------------------- Pallas kernel --------------------------------
def _spade_embed_kernel(eps, hidden, tile_rows, nsem,
                        wids_ref,            # scalar prefetch: (R_pad,) int32 in SMEM
                        idx_ref,             # (tile_rows, 4) int32: [type, seqPos, absX, absY] (offsets pre-added)
                        stab_ref,            # (N_small_pad, H_pad) f32: concat'd small tables
                        gamma_ref,           # (1, H_pad) f32
                        beta_ref,            # (1, H_pad) f32
                        wtab_ref,            # (V, H_pad) f32, stays in HBM (pl.ANY)
                        out_ref,             # (tile_rows, H_pad) f32
                        wbuf_ref,            # (2, tile_rows, H_pad) f32 VMEM scratch (double buffer)
                        sems):               # (2*nsem,) DMA semaphores (one bank per slot)
    t = pl.program_id(0)
    cur = t & 1                              # slot holding THIS tile's word rows
    nxt = 1 - cur                            # slot the NEXT tile will be gathered into
    unroll = 8 if tile_rows % 8 == 0 else 1

    # ---- word-embedding row gather helpers (HBM -> VMEM, per-row DMAs) ----
    def start_tile(tile_idx, slot):
        base = tile_idx * tile_rows

        def start_row(r, carry):
            wid = wids_ref[base + r]                       # SMEM scalar read (before any wait)
            pltpu.make_async_copy(
                wtab_ref.at[pl.ds(wid, 1), :],
                wbuf_ref.at[slot, pl.ds(r, 1), :],
                sems.at[slot * nsem + (r & (nsem - 1))]).start()
            return carry

        jax.lax.fori_loop(0, tile_rows, start_row, 0, unroll=unroll)

    def wait_tile(slot):
        def wait_row(r, carry):
            # Wait descriptor only needs matching size + semaphore slot; data is
            # consumed only after ALL rows of the slot are waited, so completion
            # order across rows sharing a semaphore does not matter.
            pltpu.make_async_copy(
                wtab_ref.at[pl.ds(0, 1), :],
                wbuf_ref.at[slot, pl.ds(r, 1), :],
                sems.at[slot * nsem + (r & (nsem - 1))]).wait()
            return carry

        jax.lax.fori_loop(0, tile_rows, wait_row, 0, unroll=unroll)

    # ---- prologue: the first grid step must start its own tile's gather ----
    # (Cross-step double buffering => grid axis runs sequentially: "arbitrary".)
    @pl.when(t == 0)
    def _():
        start_tile(0, 0)

    # ---- compute that does NOT depend on gathered word rows (overlaps DMAs) ----
    n_small = stab_ref.shape[0]
    iota = jax.lax.broadcasted_iota(jnp.int32, (tile_rows, n_small), 1)
    idx = idx_ref[...]                                     # (tile_rows, 4)
    # Index segments are disjoint (offsets + clamping in the wrapper) => OR is exact.
    hit = ((iota == idx[:, 0:1]) | (iota == idx[:, 1:2]) |
           (iota == idx[:, 2:3]) | (iota == idx[:, 3:4]))
    small = jnp.dot(hit.astype(jnp.float32), stab_ref[...],
                    preferred_element_type=jnp.float32)    # (tile_rows, H_pad)
    gamma = gamma_ref[...]
    beta = beta_ref[...]

    # ---- start NEXT tile's gather into the other slot BEFORE waiting ----
    # Its SMEM id reads stay ahead of the waits and its transfers overlap this
    # step's waits, LayerNorm and output writeback.
    @pl.when(t + 1 < pl.num_programs(0))
    def _():
        start_tile(t + 1, nxt)

    # ---- wait for the current tile's rows (started during the previous step) ----
    wait_tile(cur)

    word = wbuf_ref[cur]                                   # (tile_rows, H_pad)
    emb = word + small

    # ---- LayerNorm over the real hidden dim (no lane mask needed: padded
    #      lanes of emb are exactly 0; padded output lanes are killed by
    #      zero-padded gamma/beta and sliced off in the wrapper) ----
    h_pad = emb.shape[-1]
    inv_h = 1.0 / float(hidden)
    mean = jnp.sum(emb, axis=-1, keepdims=True) * inv_h
    if hidden == h_pad:                                    # static branch
        centered = emb - mean
        var = jnp.sum(centered * centered, axis=-1, keepdims=True) * inv_h
        normed = centered * jax.lax.rsqrt(var + eps)
    else:
        var = jnp.sum(emb * emb, axis=-1, keepdims=True) * inv_h - mean * mean
        normed = (emb - mean) * jax.lax.rsqrt(var + eps)
    out = normed * gamma + beta
    # TODO(synk): dropout is identity here (eval mode); training-mode dropout
    # would use pltpu.prng_seed / pltpu.prng_random_bits.
    out_ref[...] = out.astype(out_ref.dtype)


# ------------------------------ JAX wrapper ----------------------------------
def spade_input_embeddings(input_ids, rn_center_x_ids, rn_center_y_ids,
                           token_type_ids, params, *, n_dist_unit, eps,
                           tile_rows=256, dma_depth=8):
    """input_ids/token_type_ids: (B, S) int32; rn_center_{x,y}_ids: (B, S, S) int32."""
    B, S = input_ids.shape
    H = params["word"].shape[1]
    H_pad = _round_up(H, 128)
    R = B * S
    R_pad = _round_up(R, tile_rows)
    num_tiles = R_pad // tile_rows
    # Completion-tracking semaphores per buffer slot (power of two, <= tile_rows).
    # The number of OUTSTANDING DMAs is tile_rows (whole next tile in flight).
    nsem = max(1, min(dma_depth, tile_rows))
    while nsem & (nsem - 1):
        nsem &= nsem - 1
    f32 = jnp.float32

    # --- parameter glue: pad hidden dim to a lane-dense multiple of 128 ---
    def pad_h(tab):
        tab = tab.astype(f32)
        return jnp.pad(tab, ((0, 0), (0, H_pad - tab.shape[-1])))

    word_tab = pad_h(params["word"])                 # stays in HBM
    type_tab = pad_h(params["type"])
    pos_tab = pad_h(params["pos"])
    posx_tab = pad_h(params["pos_x"])
    posy_tab = pad_h(params["pos_y"])
    gamma2 = pad_h(params["gamma"].reshape(1, H))
    beta2 = pad_h(params["beta"].reshape(1, H))
    vocab = word_tab.shape[0]

    # Concatenated small additive tables: [type | seqPos | absPos-x | absPos-y],
    # rows padded to a multiple of 8 (sublane-native contraction dim).
    small_tab = jnp.concatenate([type_tab, pos_tab, posx_tab, posy_tab], axis=0)
    off_seq = type_tab.shape[0]
    off_x = off_seq + pos_tab.shape[0]
    off_y = off_x + posx_tab.shape[0]
    n_small = small_tab.shape[0]
    n_small_pad = _round_up(n_small, 8)
    small_tab = jnp.pad(small_tab, ((0, n_small_pad - n_small), (0, 0)))

    # --- per-row index glue (flattened over B*S, padded rows reuse index 0) ---
    def pad_rows(a):
        return jnp.pad(a.astype(jnp.int32).reshape(-1), (0, R_pad - R))

    # Clamp every id to its table (torch would raise on OOB; an OOB word id
    # would otherwise drive an unchecked HBM gather).  Clamping per segment also
    # keeps the concatenated index ranges disjoint (needed for the OR multi-hot).
    word_ids = pad_rows(jnp.clip(input_ids, 0, vocab - 1))              # SMEM scalar prefetch
    tt_ids = pad_rows(jnp.clip(token_type_ids, 0, type_tab.shape[0] - 1))
    seq = jnp.broadcast_to(jnp.arange(S, dtype=jnp.int32), (B, S))
    seq_ids = pad_rows(jnp.clip(seq, 0, pos_tab.shape[0] - 1)) + off_seq
    x_ids = pad_rows(jnp.clip(rn_center_x_ids[:, 0] + n_dist_unit,
                              0, posx_tab.shape[0] - 1)) + off_x
    y_ids = pad_rows(jnp.clip(rn_center_y_ids[:, 0] + n_dist_unit,
                              0, posy_tab.shape[0] - 1)) + off_y
    idx_packed = jnp.stack([tt_ids, seq_ids, x_ids, y_ids], axis=-1)    # (R_pad, 4)

    # --- grid & specs ---
    idx_spec = pl.BlockSpec((tile_rows, 4), lambda t, wids: (t, 0))
    out_spec = pl.BlockSpec((tile_rows, H_pad), lambda t, wids: (t, 0))

    def resident(arr):                       # grid-invariant VMEM table
        return pl.BlockSpec(arr.shape, lambda t, wids, nd=arr.ndim: (0,) * nd)

    grid_spec = pltpu.PrefetchScalarGridSpec(
        num_scalar_prefetch=1,
        grid=(num_tiles,),
        in_specs=[
            idx_spec,
            resident(small_tab),
            resident(gamma2),
            resident(beta2),
            pl.BlockSpec(memory_space=pl.ANY),      # word table stays in HBM
        ],
        out_specs=out_spec,
        scratch_shapes=[
            pltpu.VMEM((2, tile_rows, H_pad), jnp.float32),   # double-buffered gather
            pltpu.SemaphoreType.DMA((2 * nsem,)),             # one bank per slot
        ],
    )

    cost = pl.CostEstimate(
        flops=int(2 * R_pad * n_small_pad * H_pad + 10 * R_pad * H_pad),
        transcendentals=int(R_pad),
        bytes_accessed=int(4 * (2 * R_pad * H_pad       # gathered word rows + output
                                + 5 * R_pad             # indices
                                + n_small_pad * H_pad   # small tables
                                + 2 * H_pad)),          # gamma/beta
    )

    out = pl.pallas_call(
        functools.partial(_spade_embed_kernel, eps, H, tile_rows, nsem),
        out_shape=jax.ShapeDtypeStruct((R_pad, H_pad), jnp.float32),
        grid_spec=grid_spec,
        # Cross-grid-step DMA double buffering keeps state in scratch between
        # steps, so the tile axis must run sequentially on one core.
        compiler_params=pltpu.CompilerParams(dimension_semantics=("arbitrary",)),
        cost_estimate=cost,
    )(word_ids, idx_packed, small_tab, gamma2, beta2, word_tab)

    return out[:R, :H].reshape(B, S, H)


# ----------------------------- pure-JAX reference ----------------------------
def _reference(input_ids, rn_center_x_ids, rn_center_y_ids, token_type_ids,
               params, *, n_dist_unit, eps):
    B, S = input_ids.shape
    emb = params["word"][input_ids] + params["type"][token_type_ids]
    emb = emb + params["pos"][jnp.arange(S)][None]
    emb = emb + params["pos_x"][rn_center_x_ids[:, 0] + n_dist_unit]
    emb = emb + params["pos_y"][rn_center_y_ids[:, 0] + n_dist_unit]
    mean = emb.mean(-1, keepdims=True)
    var = ((emb - mean) ** 2).mean(-1, keepdims=True)
    return (emb - mean) / jnp.sqrt(var + eps) * params["gamma"] + params["beta"]


# ---------------------------------- main --------------------------------------
if __name__ == "__main__":
    # Small config consistent with the module.
    B, S, H = 2, 8, 32
    vocab_size = 50
    type_vocab_size = 2
    max_position_embeddings = 16
    pad_token_id = 0
    n_dist_unit = 10
    n_pos = 2 * n_dist_unit + 1
    eps = 1e-12

    key = jax.random.PRNGKey(0)
    kw, kt, kp, kpx, kpy, ki, ktt, kx, ky = jax.random.split(key, 9)

    # Deterministic parameter init (matches __init__ shapes).  Note: torch inits
    # pos_x/pos_y to zeros; we use small random values here so the test actually
    # exercises the absPos gather path (reference uses the same tables).
    word_tab = jax.random.normal(kw, (vocab_size, H), jnp.float32) * 0.02
    word_tab = word_tab.at[pad_token_id].set(0.0)                  # padding_idx
    type_tab = jax.random.normal(kt, (type_vocab_size, H), jnp.float32) * 0.02
    pos_tab = jax.random.normal(kp, (max_position_embeddings, H), jnp.float32) * 0.02
    pos_x_tab = jax.random.normal(kpx, (n_pos, H), jnp.float32) * 0.02
    pos_y_tab = jax.random.normal(kpy, (n_pos, H), jnp.float32) * 0.02
    gamma = jnp.ones((H,), jnp.float32)
    beta = jnp.zeros((H,), jnp.float32)

    params = dict(word=word_tab, type=type_tab, pos=pos_tab,
                  pos_x=pos_x_tab, pos_y=pos_y_tab, gamma=gamma, beta=beta)

    # Deterministic example inputs.
    input_ids = jax.random.randint(ki, (B, S), 0, vocab_size, jnp.int32)
    token_type_ids = jax.random.randint(ktt, (B, S), 0, type_vocab_size, jnp.int32)
    rn_center_x_ids = jax.random.randint(kx, (B, S, S), -n_dist_unit, n_dist_unit + 1, jnp.int32)
    rn_center_y_ids = jax.random.randint(ky, (B, S, S), -n_dist_unit, n_dist_unit + 1, jnp.int32)

    ref = _reference(input_ids, rn_center_x_ids, rn_center_y_ids, token_type_ids,
                     params, n_dist_unit=n_dist_unit, eps=eps)

    # 1) Small tiles -> 2 grid steps: exercises the cross-step double-buffered
    #    gather (prologue + next-tile prefetch + slot swap).
    out_multi = spade_input_embeddings(input_ids, rn_center_x_ids, rn_center_y_ids,
                                       token_type_ids, params,
                                       n_dist_unit=n_dist_unit, eps=eps,
                                       tile_rows=8, dma_depth=8)
    out_multi = jax.block_until_ready(out_multi)
    assert out_multi.shape == (B, S, H) and out_multi.dtype == jnp.float32
    assert jnp.allclose(out_multi, ref, atol=2e-5, rtol=2e-5), "multi-tile mismatch vs reference"

    # 2) Default (production) tiling: single 256-row tile, prologue-only path.
    out = spade_input_embeddings(input_ids, rn_center_x_ids, rn_center_y_ids,
                                 token_type_ids, params,
                                 n_dist_unit=n_dist_unit, eps=eps)
    out = jax.block_until_ready(out)
    assert out.shape == (B, S, H) and out.dtype == jnp.float32
    assert jnp.allclose(out, ref, atol=2e-5, rtol=2e-5), "default-tile mismatch vs reference"

    print("KERNEL_OK")
</pallas_src>

<mosaic_0001>
module attributes {stable_mosaic.version = 11 : i64} {
  func.func @_spade_embed_kernel(%arg0: i32, %arg1: memref<16xi32, #tpu.memory_space<smem>>, %arg2: memref<8x4xi32, #tpu.memory_space<vmem>>, %arg3: memref<64x128xf32, #tpu.memory_space<vmem>>, %arg4: memref<1x128xf32, #tpu.memory_space<vmem>>, %arg5: memref<1x128xf32, #tpu.memory_space<vmem>>, %arg6: memref<50x128xf32, #tpu.memory_space<any>>, %arg7: memref<8x128xf32, #tpu.memory_space<vmem>>, %arg8: memref<2x8x128xf32, #tpu.memory_space<vmem>>, %arg9: memref<16x!tpu.dma_semaphore, #tpu.memory_space<semaphore_mem>>) attributes {dimension_semantics = [#tpu.dimension_semantics<arbitrary>], iteration_bounds = array<i64: 2>, scalar_prefetch = 1 : i64, scratch_operands = 2 : i64, tpu.core_type = #tpu.core_type<tc>, window_params = [{transform_indices = @transform_0, window_bounds = array<i64: 8, 4>}, {pipeline_mode = #tpu.pipeline_mode<synchronous>, transform_indices = @transform_1, window_bounds = array<i64: 64, 128>}, {pipeline_mode = #tpu.pipeline_mode<synchronous>, transform_indices = @transform_2, window_bounds = array<i64: 1, 128>}, {pipeline_mode = #tpu.pipeline_mode<synchronous>, transform_indices = @transform_3, window_bounds = array<i64: 1, 128>}, {}, {transform_indices = @transform_5, window_bounds = array<i64: 8, 128>}]} {
    %c1_i32 = arith.constant 1 : i32
    %0 = arith.andi %arg0, %c1_i32 : i32
    %c1_i32_0 = arith.constant 1 : i32
    %1 = arith.subi %c1_i32_0, %0 : i32
    %c0_i32 = arith.constant 0 : i32
    %2 = arith.cmpi eq, %arg0, %c0_i32 : i32
    %3 = arith.extui %2 : i1 to i32
    %c0_i32_1 = arith.constant 0 : i32
    %4 = arith.cmpi ne, %3, %c0_i32_1 : i32
    scf.if %4 {
      %c0_i32_63 = arith.constant 0 : i32
      %c0_i32_64 = arith.constant 0 : i32
      %123 = arith.addi %c0_i32_64, %c0_i32_63 : i32
      %124 = arith.index_cast %123 : i32 to index
      %125 = memref.load %arg1[%124] : memref<16xi32, #tpu.memory_space<smem>>
      %c7_i32_65 = arith.constant 7 : i32
      %126 = arith.andi %c0_i32_63, %c7_i32_65 : i32
      %c0_i32_66 = arith.constant 0 : i32
      %127 = arith.addi %c0_i32_66, %126 : i32
      %c0_i32_67 = arith.constant 0 : i32
      %c0_i32_68 = arith.constant 0 : i32
      %128 = tpu.memref_slice %arg6[%125, %c0_i32_68] : memref<50x128xf32, #tpu.memory_space<any>> -> memref<1x128xf32, #tpu.memory_space<any>>
      %c0_i32_69 = arith.constant 0 : i32
      %129 = tpu.memref_slice %arg8[%c0_i32_67, %c0_i32_63, %c0_i32_69] : memref<2x8x128xf32, #tpu.memory_space<vmem>> -> memref<1x1x128xf32, #tpu.memory_space<vmem>>
      %130 = tpu.memref_squeeze %129 : memref<1x1x128xf32, #tpu.memory_space<vmem>> -> memref<1x128xf32, #tpu.memory_space<vmem>>
      %131 = tpu.memref_slice %arg9[%127] : memref<16x!tpu.dma_semaphore, #tpu.memory_space<semaphore_mem>> -> memref<1x!tpu.dma_semaphore, #tpu.memory_space<semaphore_mem>>
      %132 = tpu.memref_squeeze %131 : memref<1x!tpu.dma_semaphore, #tpu.memory_space<semaphore_mem>> -> memref<!tpu.dma_semaphore, #tpu.memory_space<semaphore_mem>>
      tpu.enqueue_dma source(%128 : memref<1x128xf32, #tpu.memory_space<any>>) target(%130 : memref<1x128xf32, #tpu.memory_space<vmem>>) target_semaphore(%132 : memref<!tpu.dma_semaphore, #tpu.memory_space<semaphore_mem>>)
      %c1_i32_70 = arith.constant 1 : i32
      %c0_i32_71 = arith.constant 0 : i32
      %133 = arith.addi %c0_i32_71, %c1_i32_70 : i32
      %134 = arith.index_cast %133 : i32 to index
      %135 = memref.load %arg1[%134] : memref<16xi32, #tpu.memory_space<smem>>
      %c7_i32_72 = arith.constant 7 : i32
      %136 = arith.andi %c1_i32_70, %c7_i32_72 : i32
      %c0_i32_73 = arith.constant 0 : i32
      %137 = arith.addi %c0_i32_73, %136 : i32
      %c0_i32_74 = arith.constant 0 : i32
      %c0_i32_75 = arith.constant 0 : i32
      %138 = tpu.memref_slice %arg6[%135, %c0_i32_75] : memref<50x128xf32, #tpu.memory_space<any>> -> memref<1x128xf32, #tpu.memory_space<any>>
      %c0_i32_76 = arith.constant 0 : i32
      %139 = tpu.memref_slice %arg8[%c0_i32_74, %c1_i32_70, %c0_i32_76] : memref<2x8x128xf32, #tpu.memory_space<vmem>> -> memref<1x1x128xf32, #tpu.memory_space<vmem>>
      %140 = tpu.memref_squeeze %139 : memref<1x1x128xf32, #tpu.memory_space<vmem>> -> memref<1x128xf32, #tpu.memory_space<vmem>>
      %141 = tpu.memref_slice %arg9[%137] : memref<16x!tpu.dma_semaphore, #tpu.memory_space<semaphore_mem>> -> memref<1x!tpu.dma_semaphore, #tpu.memory_space<semaphore_mem>>
      %142 = tpu.memref_squeeze %141 : memref<1x!tpu.dma_semaphore, #tpu.memory_space<semaphore_mem>> -> memref<!tpu.dma_semaphore, #tpu.memory_space<semaphore_mem>>
      tpu.enqueue_dma source(%138 : memref<1x128xf32, #tpu.memory_space<any>>) target(%140 : memref<1x128xf32, #tpu.memory_space<vmem>>) target_semaphore(%142 : memref<!tpu.dma_semaphore, #tpu.memory_space<semaphore_mem>>)
      %c2_i32_77 = arith.constant 2 : i32
      %c0_i32_78 = arith.constant 0 : i32
      %143 = arith.addi %c0_i32_78, %c2_i32_77 : i32
      %144 = arith.index_cast %143 : i32 to index
      %145 = memref.load %arg1[%144] : memref<16xi32, #tpu.memory_space<smem>>
      %c7_i32_79 = arith.constant 7 : i32
      %146 = arith.andi %c2_i32_77, %c7_i32_79 : i32
      %c0_i32_80 = arith.constant 0 : i32
      %147 = arith.addi %c0_i32_80, %146 : i32
      %c0_i32_81 = arith.constant 0 : i32
      %c0_i32_82 = arith.constant 0 : i32
      %148 = tpu.memref_slice %arg6[%145, %c0_i32_82] : memref<50x128xf32, #tpu.memory_space<any>> -> memref<1x128xf32, #tpu.memory_space<any>>
      %c0_i32_83 = arith.constant 0 : i32
      %149 = tpu.memref_slice %arg8[%c0_i32_81, %c2_i32_77, %c0_i32_83] : memref<2x8x128xf32, #tpu.memory_space<vmem>> -> memref<1x1x128xf32, #tpu.memory_space<vmem>>
      %150 = tpu.memref_squeeze %149 : memref<1x1x128xf32, #tpu.memory_space<vmem>> -> memref<1x128xf32, #tpu.memory_space<vmem>>
      %151 = tpu.memref_slice %arg9[%147] : memref<16x!tpu.dma_semaphore, #tpu.memory_space<semaphore_mem>> -> memref<1x!tpu.dma_semaphore, #tpu.memory_space<semaphore_mem>>
      %152 = tpu.memref_squeeze %151 : memref<1x!tpu.dma_semaphore, #tpu.memory_space<semaphore_mem>> -> memref<!tpu.dma_semaphore, #tpu.memory_space<semaphore_mem>>
      tpu.enqueue_dma source(%148 : memref<1x128xf32, #tpu.memory_space<any>>) target(%150 : memref<1x128xf32, #tpu.memory_space<vmem>>) target_semaphore(%152 : memref<!tpu.dma_semaphore, #tpu.memory_space<semaphore_mem>>)
      %c3_i32_84 = arith.constant 3 : i32
      %c0_i32_85 = arith.constant 0 : i32
      %153 = arith.addi %c0_i32_85, %c3_i32_84 : i32
      %154 = arith.index_cast %153 : i32 to index
      %155 = memref.load %arg1[%154] : memref<16xi32, #tpu.memory_space<smem>>
      %c7_i32_86 = arith.constant 7 : i32
      %156 = arith.andi %c3_i32_84, %c7_i32_86 : i32
      %c0_i32_87 = arith.constant 0 : i32
      %157 = arith.addi %c0_i32_87, %156 : i32
      %c0_i32_88 = arith.constant 0 : i32
      %c0_i32_89 = arith.constant 0 : i32
      %158 = tpu.memref_slice %arg6[%155, %c0_i32_89] : memref<50x128xf32, #tpu.memory_space<any>> -> memref<1x128xf32, #tpu.memory_space<any>>
      %c0_i32_90 = arith.constant 0 : i32
      %159 = tpu.memref_slice %arg8[%c0_i32_88, %c3_i32_84, %c0_i32_90] : memref<2x8x128xf32, #tpu.memory_space<vmem>> -> memref<1x1x128xf32, #tpu.memory_space<vmem>>
      %160 = tpu.memref_squeeze %159 : memref<1x1x128xf32, #tpu.memory_space<vmem>> -> memref<1x128xf32, #tpu.memory_space<vmem>>
      %161 = tpu.memref_slice %arg9[%157] : memref<16x!tpu.dma_semaphore, #tpu.memory_space<semaphore_mem>> -> memref<1x!tpu.dma_semaphore, #tpu.memory_space<semaphore_mem>>
      %162 = tpu.memref_squeeze %161 : memref<1x!tpu.dma_semaphore, #tpu.memory_space<semaphore_mem>> -> memref<!tpu.dma_semaphore, #tpu.memory_space<semaphore_mem>>
      tpu.enqueue_dma source(%158 : memref<1x128xf32, #tpu.memory_space<any>>) target(%160 : memref<1x128xf32, #tpu.memory_space<vmem>>) target_semaphore(%162 : memref<!tpu.dma_semaphore, #tpu.memory_space<semaphore_mem>>)
      %c4_i32_91 = arith.constant 4 : i32
      %c0_i32_92 = arith.constant 0 : i32
      %163 = arith.addi %c0_i32_92, %c4_i32_91 : i32
      %164 = arith.index_cast %163 : i32 to index
      %165 = memref.load %arg1[%164] : memref<16xi32, #tpu.memory_space<smem>>
      %c7_i32_93 = arith.constant 7 : i32
      %166 = arith.andi %c4_i32_91, %c7_i32_93 : i32
      %c0_i32_94 = arith.constant 0 : i32
      %167 = arith.addi %c0_i32_94, %166 : i32
      %c0_i32_95 = arith.constant 0 : i32
      %c0_i32_96 = arith.constant 0 : i32
      %168 = tpu.memref_slice %arg6[%165, %c0_i32_96] : memref<50x128xf32, #tpu.memory_space<any>> -> memref<1x128xf32, #tpu.memory_space<any>>
      %c0_i32_97 = arith.constant 0 : i32
      %169 = tpu.memref_slice %arg8[%c0_i32_95, %c4_i32_91, %c0_i32_97] : memref<2x8x128xf32, #tpu.memory_space<vmem>> -> memref<1x1x128xf32, #tpu.memory_space<vmem>>
      %170 = tpu.memref_squeeze %169 : memref<1x1x128xf32, #tpu.memory_space<vmem>> -> memref<1x128xf32, #tpu.memory_space<vmem>>
      %171 = tpu.memref_slice %arg9[%167] : memref<16x!tpu.dma_semaphore, #tpu.memory_space<semaphore_mem>> -> memref<1x!tpu.dma_semaphore, #tpu.memory_space<semaphore_mem>>
      %172 = tpu.memref_squeeze %171 : memref<1x!tpu.dma_semaphore, #tpu.memory_space<semaphore_mem>> -> memref<!tpu.dma_semaphore, #tpu.memory_space<semaphore_mem>>
      tpu.enqueue_dma source(%168 : memref<1x128xf32, #tpu.memory_space<any>>) target(%170 : memref<1x128xf32, #tpu.memory_space<vmem>>) target_semaphore(%172 : memref<!tpu.dma_semaphore, #tpu.memory_space<semaphore_mem>>)
      %c5_i32_98 = arith.constant 5 : i32
      %c0_i32_99 = arith.constant 0 : i32
      %173 = arith.addi %c0_i32_99, %c5_i32_98 : i32
      %174 = arith.index_cast %173 : i32 to index
      %175 = memref.load %arg1[%174] : memref<16xi32, #tpu.memory_space<smem>>
      %c7_i32_100 = arith.constant 7 : i32
      %176 = arith.andi %c5_i32_98, %c7_i32_100 : i32
      %c0_i32_101 = arith.constant 0 : i32
      %177 = arith.addi %c0_i32_101, %176 : i32
      %c0_i32_102 = arith.constant 0 : i32
      %c0_i32_103 = arith.constant 0 : i32
      %178 = tpu.memref_slice %arg6[%175, %c0_i32_103] : memref<50x128xf32, #tpu.memory_space<any>> -> memref<1x128xf32, #tpu.memory_space<any>>
      %c0_i32_104 = arith.constant 0 : i32
      %179 = tpu.memref_slice %arg8[%c0_i32_102, %c5_i32_98, %c0_i32_104] : memref<2x8x128xf32, #tpu.memory_space<vmem>> -> memref<1x1x128xf32, #tpu.memory_space<vmem>>
      %180 = tpu.memref_squeeze %179 : memref<1x1x128xf32, #tpu.memory_space<vmem>> -> memref<1x128xf32, #tpu.memory_space<vmem>>
      %181 = tpu.memref_slice %arg9[%177] : memref<16x!tpu.dma_semaphore, #tpu.memory_space<semaphore_mem>> -> memref<1x!tpu.dma_semaphore, #tpu.memory_space<semaphore_mem>>
      %182 = tpu.memref_squeeze %181 : memref<1x!tpu.dma_semaphore, #tpu.memory_space<semaphore_mem>> -> memref<!tpu.dma_semaphore, #tpu.memory_space<semaphore_mem>>
      tpu.enqueue_dma source(%178 : memref<1x128xf32, #tpu.memory_space<any>>) target(%180 : memref<1x128xf32, #tpu.memory_space<vmem>>) target_semaphore(%182 : memref<!tpu.dma_semaphore, #tpu.memory_space<semaphore_mem>>)
      %c6_i32_105 = arith.constant 6 : i32
      %c0_i32_106 = arith.constant 0 : i32
      %183 = arith.addi %c0_i32_106, %c6_i32_105 : i32
      %184 = arith.index_cast %183 : i32 to index
      %185 = memref.load %arg1[%184] : memref<16xi32, #tpu.memory_space<smem>>
      %c7_i32_107 = arith.constant 7 : i32
      %186 = arith.andi %c6_i32_105, %c7_i32_107 : i32
      %c0_i32_108 = arith.constant 0 : i32
      %187 = arith.addi %c0_i32_108, %186 : i32
      %c0_i32_109 = arith.constant 0 : i32
      %c0_i32_110 = arith.constant 0 : i32
      %188 = tpu.memref_slice %arg6[%185, %c0_i32_110] : memref<50x128xf32, #tpu.memory_space<any>> -> memref<1x128xf32, #tpu.memory_space<any>>
      %c0_i32_111 = arith.constant 0 : i32
      %189 = tpu.memref_slice %arg8[%c0_i32_109, %c6_i32_105, %c0_i32_111] : memref<2x8x128xf32, #tpu.memory_space<vmem>> -> memref<1x1x128xf32, #tpu.memory_space<vmem>>
      %190 = tpu.memref_squeeze %189 : memref<1x1x128xf32, #tpu.memory_space<vmem>> -> memref<1x128xf32, #tpu.memory_space<vmem>>
      %191 = tpu.memref_slice %arg9[%187] : memref<16x!tpu.dma_semaphore, #tpu.memory_space<semaphore_mem>> -> memref<1x!tpu.dma_semaphore, #tpu.memory_space<semaphore_mem>>
      %192 = tpu.memref_squeeze %191 : memref<1x!tpu.dma_semaphore, #tpu.memory_space<semaphore_mem>> -> memref<!tpu.dma_semaphore, #tpu.memory_space<semaphore_mem>>
      tpu.enqueue_dma source(%188 : memref<1x128xf32, #tpu.memory_space<any>>) target(%190 : memref<1x128xf32, #tpu.memory_space<vmem>>) target_semaphore(%192 : memref<!tpu.dma_semaphore, #tpu.memory_space<semaphore_mem>>)
      %c7_i32_112 = arith.constant 7 : i32
      %c0_i32_113 = arith.constant 0 : i32
      %193 = arith.addi %c0_i32_113, %c7_i32_112 : i32
      %194 = arith.index_cast %193 : i32 to index
      %195 = memref.load %arg1[%194] : memref<16xi32, #tpu.memory_space<smem>>
      %c7_i32_114 = arith.constant 7 : i32
      %196 = arith.andi %c7_i32_112, %c7_i32_114 : i32
      %c0_i32_115 = arith.constant 0 : i32
      %197 = arith.addi %c0_i32_115, %196 : i32
      %c0_i32_116 = arith.constant 0 : i32
      %c0_i32_117 = arith.constant 0 : i32
      %198 = tpu.memref_slice %arg6[%195, %c0_i32_117] : memref<50x128xf32, #tpu.memory_space<any>> -> memref<1x128xf32, #tpu.memory_space<any>>
      %c0_i32_118 = arith.constant 0 : i32
      %199 = tpu.memref_slice %arg8[%c0_i32_116, %c7_i32_112, %c0_i32_118] : memref<2x8x128xf32, #tpu.memory_space<vmem>> -> memref<1x1x128xf32, #tpu.memory_space<vmem>>
      %200 = tpu.memref_squeeze %199 : memref<1x1x128xf32, #tpu.memory_space<vmem>> -> memref<1x128xf32, #tpu.memory_space<vmem>>
      %201 = tpu.memref_slice %arg9[%197] : memref<16x!tpu.dma_semaphore, #tpu.memory_space<semaphore_mem>> -> memref<1x!tpu.dma_semaphore, #tpu.memory_space<semaphore_mem>>
      %202 = tpu.memref_squeeze %201 : memref<1x!tpu.dma_semaphore, #tpu.memory_space<semaphore_mem>> -> memref<!tpu.dma_semaphore, #tpu.memory_space<semaphore_mem>>
      tpu.enqueue_dma source(%198 : memref<1x128xf32, #tpu.memory_space<any>>) target(%200 : memref<1x128xf32, #tpu.memory_space<vmem>>) target_semaphore(%202 : memref<!tpu.dma_semaphore, #tpu.memory_space<semaphore_mem>>)
      %c8_i32_119 = arith.constant 8 : i32
    } else {
    }
    %5 = tpu.iota {dimensions = array<i32: 1>} : vector<8x64xi32>
    %c0 = arith.constant 0 : index
    %c0_2 = arith.constant 0 : index
    %6 = vector.load %arg2[%c0, %c0_2] : memref<8x4xi32, #tpu.memory_space<vmem>>, vector<8x4xi32>
    %7 = vector.extract_strided_slice %6 {offsets = [0, 0], sizes = [8, 1], strides = [1, 1]} : vector<8x4xi32> to vector<8x1xi32>
    %8 = vector.broadcast %7 : vector<8x1xi32> to vector<8x64xi32>
    %9 = arith.cmpi eq, %5, %8 : vector<8x64xi32>
    %10 = vector.extract_strided_slice %6 {offsets = [0, 1], sizes = [8, 1], strides = [1, 1]} : vector<8x4xi32> to vector<8x1xi32>
    %11 = vector.broadcast %10 : vector<8x1xi32> to vector<8x64xi32>
    %12 = arith.cmpi eq, %5, %11 : vector<8x64xi32>
    %13 = arith.ori %9, %12 : vector<8x64xi1>
    %14 = vector.extract_strided_slice %6 {offsets = [0, 2], sizes = [8, 1], strides = [1, 1]} : vector<8x4xi32> to vector<8x1xi32>
    %15 = vector.broadcast %14 : vector<8x1xi32> to vector<8x64xi32>
    %16 = arith.cmpi eq, %5, %15 : vector<8x64xi32>
    %17 = arith.ori %13, %16 : vector<8x64xi1>
    %18 = vector.extract_strided_slice %6 {offsets = [0, 3], sizes = [8, 1], strides = [1, 1]} : vector<8x4xi32> to vector<8x1xi32>
    %19 = vector.broadcast %18 : vector<8x1xi32> to vector<8x64xi32>
    %20 = arith.cmpi eq, %5, %19 : vector<8x64xi32>
    %21 = arith.ori %17, %20 : vector<8x64xi1>
    %22 = arith.extui %21 : vector<8x64xi1> to vector<8x64xi32>
    %23 = arith.sitofp %22 : vector<8x64xi32> to vector<8x64xf32>
    %c0_3 = arith.constant 0 : index
    %c0_4 = arith.constant 0 : index
    %24 = vector.load %arg3[%c0_3, %c0_4] : memref<64x128xf32, #tpu.memory_space<vmem>>, vector<64x128xf32>
    %cst = arith.constant dense<0.000000e+00> : vector<8x128xf32>
    %25 = tpu.matmul %23, %24, %cst {dimension_numbers = #tpu.dot_dimension_numbers<[1], [0], [0], [1], [0, 0, 1, 1], [], []>} : vector<8x64xf32>, vector<64x128xf32>, vector<8x128xf32> -> vector<8x128xf32>
    %c0_5 = arith.constant 0 : index
    %c0_6 = arith.constant 0 : index
    %26 = vector.load %arg4[%c0_5, %c0_6] : memref<1x128xf32, #tpu.memory_space<vmem>>, vector<1x128xf32>
    %c0_7 = arith.constant 0 : index
    %c0_8 = arith.constant 0 : index
    %27 = vector.load %arg5[%c0_7, %c0_8] : memref<1x128xf32, #tpu.memory_space<vmem>>, vector<1x128xf32>
    %c1_i32_9 = arith.constant 1 : i32
    %28 = arith.addi %arg0, %c1_i32_9 : i32
    %c2_i32 = arith.constant 2 : i32
    %29 = arith.cmpi slt, %28, %c2_i32 : i32
    %30 = arith.extui %29 : i1 to i32
    %c0_i32_10 = arith.constant 0 : i32
    %31 = arith.cmpi ne, %30, %c0_i32_10 : i32
    scf.if %31 {
      %c1_i32_63 = arith.constant 1 : i32
      %123 = arith.addi %arg0, %c1_i32_63 : i32
      %c8_i32_64 = arith.constant 8 : i32
      %124 = arith.muli %123, %c8_i32_64 : i32
      %c0_i32_65 = arith.constant 0 : i32
      %125 = arith.addi %124, %c0_i32_65 : i32
      %126 = arith.index_cast %125 : i32 to index
      %127 = memref.load %arg1[%126] : memref<16xi32, #tpu.memory_space<smem>>
      %c8_i32_66 = arith.constant 8 : i32
      %128 = arith.muli %1, %c8_i32_66 : i32
      %c7_i32_67 = arith.constant 7 : i32
      %129 = arith.andi %c0_i32_65, %c7_i32_67 : i32
      %130 = arith.addi %128, %129 : i32
      %c0_i32_68 = arith.constant 0 : i32
      %131 = tpu.memref_slice %arg6[%127, %c0_i32_68] : memref<50x128xf32, #tpu.memory_space<any>> -> memref<1x128xf32, #tpu.memory_space<any>>
      %c0_i32_69 = arith.constant 0 : i32
      %132 = tpu.memref_slice %arg8[%1, %c0_i32_65, %c0_i32_69] : memref<2x8x128xf32, #tpu.memory_space<vmem>> -> memref<1x1x128xf32, #tpu.memory_space<vmem>>
      %133 = tpu.memref_squeeze %132 : memref<1x1x128xf32, #tpu.memory_space<vmem>> -> memref<1x128xf32, #tpu.memory_space<vmem>>
      %134 = tpu.memref_slice %arg9[%130] : memref<16x!tpu.dma_semaphore, #tpu.memory_space<semaphore_mem>> -> memref<1x!tpu.dma_semaphore, #tpu.memory_space<semaphore_mem>>
      %135 = tpu.memref_squeeze %134 : memref<1x!tpu.dma_semaphore, #tpu.memory_space<semaphore_mem>> -> memref<!tpu.dma_semaphore, #tpu.memory_space<semaphore_mem>>
      tpu.enqueue_dma source(%131 : memref<1x128xf32, #tpu.memory_space<any>>) target(%133 : memref<1x128xf32, #tpu.memory_space<vmem>>) target_semaphore(%135 : memref<!tpu.dma_semaphore, #tpu.memory_space<semaphore_mem>>)
      %c1_i32_70 = arith.constant 1 : i32
      %136 = arith.addi %124, %c1_i32_70 : i32
      %137 = arith.index_cast %136 : i32 to index
      %138 = memref.load %arg1[%137] : memref<16xi32, #tpu.memory_space<smem>>
      %c8_i32_71 = arith.constant 8 : i32
      %139 = arith.muli %1, %c8_i32_71 : i32
      %c7_i32_72 = arith.constant 7 : i32
      %140 = arith.andi %c1_i32_70, %c7_i32_72 : i32
      %141 = arith.addi %139, %140 : i32
      %c0_i32_73 = arith.constant 0 : i32
      %142 = tpu.memref_slice %arg6[%138, %c0_i32_73] : memref<50x128xf32, #tpu.memory_space<any>> -> memref<1x128xf32, #tpu.memory_space<any>>
      %c0_i32_74 = arith.constant 0 : i32
      %143 = tpu.memref_slice %arg8[%1, %c1_i32_70, %c0_i32_74] : memref<2x8x128xf32, #tpu.memory_space<vmem>> -> memref<1x1x128xf32, #tpu.memory_space<vmem>>
      %144 = tpu.memref_squeeze %143 : memref<1x1x128xf32, #tpu.memory_space<vmem>> -> memref<1x128xf32, #tpu.memory_space<vmem>>
      %145 = tpu.memref_slice %arg9[%141] : memref<16x!tpu.dma_semaphore, #tpu.memory_space<semaphore_mem>> -> memref<1x!tpu.dma_semaphore, #tpu.memory_space<semaphore_mem>>
      %146 = tpu.memref_squeeze %145 : memref<1x!tpu.dma_semaphore, #tpu.memory_space<semaphore_mem>> -> memref<!tpu.dma_semaphore, #tpu.memory_space<semaphore_mem>>
      tpu.enqueue_dma source(%142 : memref<1x128xf32, #tpu.memory_space<any>>) target(%144 : memref<1x128xf32, #tpu.memory_space<vmem>>) target_semaphore(%146 : memref<!tpu.dma_semaphore, #tpu.memory_space<semaphore_mem>>)
      %c2_i32_75 = arith.constant 2 : i32
      %147 = arith.addi %124, %c2_i32_75 : i32
      %148 = arith.index_cast %147 : i32 to index
      %149 = memref.load %arg1[%148] : memref<16xi32, #tpu.memory_space<smem>>
      %c8_i32_76 = arith.constant 8 : i32
      %150 = arith.muli %1, %c8_i32_76 : i32
      %c7_i32_77 = arith.constant 7 : i32
      %151 = arith.andi %c2_i32_75, %c7_i32_77 : i32
      %152 = arith.addi %150, %151 : i32
      %c0_i32_78 = arith.constant 0 : i32
      %153 = tpu.memref_slice %arg6[%149, %c0_i32_78] : memref<50x128xf32, #tpu.memory_space<any>> -> memref<1x128xf32, #tpu.memory_space<any>>
      %c0_i32_79 = arith.constant 0 : i32
      %154 = tpu.memref_slice %arg8[%1, %c2_i32_75, %c0_i32_79] : memref<2x8x128xf32, #tpu.memory_space<vmem>> -> memref<1x1x128xf32, #tpu.memory_space<vmem>>
      %155 = tpu.memref_squeeze %154 : memref<1x1x128xf32, #tpu.memory_space<vmem>> -> memref<1x128xf32, #tpu.memory_space<vmem>>
      %156 = tpu.memref_slice %arg9[%152] : memref<16x!tpu.dma_semaphore, #tpu.memory_space<semaphore_mem>> -> memref<1x!tpu.dma_semaphore, #tpu.memory_space<semaphore_mem>>
      %157 = tpu.memref_squeeze %156 : memref<1x!tpu.dma_semaphore, #tpu.memory_space<semaphore_mem>> -> memref<!tpu.dma_semaphore, #tpu.memory_space<semaphore_mem>>
      tpu.enqueue_dma source(%153 : memref<1x128xf32, #tpu.memory_space<any>>) target(%155 : memref<1x128xf32, #tpu.memory_space<vmem>>) target_semaphore(%157 : memref<!tpu.dma_semaphore, #tpu.memory_space<semaphore_mem>>)
      %c3_i32_80 = arith.constant 3 : i32
      %158 = arith.addi %124, %c3_i32_80 : i32
      %159 = arith.index_cast %158 : i32 to index
      %160 = memref.load %arg1[%159] : memref<16xi32, #tpu.memory_space<smem>>
      %c8_i32_81 = arith.constant 8 : i32
      %161 = arith.muli %1, %c8_i32_81 : i32
      %c7_i32_82 = arith.constant 7 : i32
      %162 = arith.andi %c3_i32_80, %c7_i32_82 : i32
      %163 = arith.addi %161, %162 : i32
      %c0_i32_83 = arith.constant 0 : i32
      %164 = tpu.memref_slice %arg6[%160, %c0_i32_83] : memref<50x128xf32, #tpu.memory_space<any>> -> memref<1x128xf32, #tpu.memory_space<any>>
      %c0_i32_84 = arith.constant 0 : i32
      %165 = tpu.memref_slice %arg8[%1, %c3_i32_80, %c0_i32_84] : memref<2x8x128xf32, #tpu.memory_space<vmem>> -> memref<1x1x128xf32, #tpu.memory_space<vmem>>
      %166 = tpu.memref_squeeze %165 : memref<1x1x128xf32, #tpu.memory_space<vmem>> -> memref<1x128xf32, #tpu.memory_space<vmem>>
      %167 = tpu.memref_slice %arg9[%163] : memref<16x!tpu.dma_semaphore, #tpu.memory_space<semaphore_mem>> -> memref<1x!tpu.dma_semaphore, #tpu.memory_space<semaphore_mem>>
      %168 = tpu.memref_squeeze %167 : memref<1x!tpu.dma_semaphore, #tpu.memory_space<semaphore_mem>> -> memref<!tpu.dma_semaphore, #tpu.memory_space<semaphore_mem>>
      tpu.enqueue_dma source(%164 : memref<1x128xf32, #tpu.memory_space<any>>) target(%166 : memref<1x128xf32, #tpu.memory_space<vmem>>) target_semaphore(%168 : memref<!tpu.dma_semaphore, #tpu.memory_space<semaphore_mem>>)
      %c4_i32_85 = arith.constant 4 : i32
      %169 = arith.addi %124, %c4_i32_85 : i32
      %170 = arith.index_cast %169 : i32 to index
      %171 = memref.load %arg1[%170] : memref<16xi32, #tpu.memory_space<smem>>
      %c8_i32_86 = arith.constant 8 : i32
      %172 = arith.muli %1, %c8_i32_86 : i32
      %c7_i32_87 = arith.constant 7 : i32
      %173 = arith.andi %c4_i32_85, %c7_i32_87 : i32
      %174 = arith.addi %172, %173 : i32
      %c0_i32_88 = arith.constant 0 : i32
      %175 = tpu.memref_slice %arg6[%171, %c0_i32_88] : memref<50x128xf32, #tpu.memory_space<any>> -> memref<1x128xf32, #tpu.memory_space<any>>
      %c0_i32_89 = arith.constant 0 : i32
      %176 = tpu.memref_slice %arg8[%1, %c4_i32_85, %c0_i32_89] : memref<2x8x128xf32, #tpu.memory_space<vmem>> -> memref<1x1x128xf32, #tpu.memory_space<vmem>>
      %177 = tpu.memref_squeeze %176 : memref<1x1x128xf32, #tpu.memory_space<vmem>> -> memref<1x128xf32, #tpu.memory_space<vmem>>
      %178 = tpu.memref_slice %arg9[%174] : memref<16x!tpu.dma_semaphore, #tpu.memory_space<semaphore_mem>> -> memref<1x!tpu.dma_semaphore, #tpu.memory_space<semaphore_mem>>
      %179 = tpu.memref_squeeze %178 : memref<1x!tpu.dma_semaphore, #tpu.memory_space<semaphore_mem>> -> memref<!tpu.dma_semaphore, #tpu.memory_space<semaphore_mem>>
      tpu.enqueue_dma source(%175 : memref<1x128xf32, #tpu.memory_space<any>>) target(%177 : memref<1x128xf32, #tpu.memory_space<vmem>>) target_semaphore(%179 : memref<!tpu.dma_semaphore, #tpu.memory_space<semaphore_mem>>)
      %c5_i32_90 = arith.constant 5 : i32
      %180 = arith.addi %124, %c5_i32_90 : i32
      %181 = arith.index_cast %180 : i32 to index
      %182 = memref.load %arg1[%181] : memref<16xi32, #tpu.memory_space<smem>>
      %c8_i32_91 = arith.constant 8 : i32
      %183 = arith.muli %1, %c8_i32_91 : i32
      %c7_i32_92 = arith.constant 7 : i32
      %184 = arith.andi %c5_i32_90, %c7_i32_92 : i32
      %185 = arith.addi %183, %184 : i32
      %c0_i32_93 = arith.constant 0 : i32
      %186 = tpu.memref_slice %arg6[%182, %c0_i32_93] : memref<50x128xf32, #tpu.memory_space<any>> -> memref<1x128xf32, #tpu.memory_space<any>>
      %c0_i32_94 = arith.constant 0 : i32
      %187 = tpu.memref_slice %arg8[%1, %c5_i32_90, %c0_i32_94] : memref<2x8x128xf32, #tpu.memory_space<vmem>> -> memref<1x1x128xf32, #tpu.memory_space<vmem>>
      %188 = tpu.memref_squeeze %187 : memref<1x1x128xf32, #tpu.memory_space<vmem>> -> memref<1x128xf32, #tpu.memory_space<vmem>>
      %189 = tpu.memref_slice %arg9[%185] : memref<16x!tpu.dma_semaphore, #tpu.memory_space<semaphore_mem>> -> memref<1x!tpu.dma_semaphore, #tpu.memory_space<semaphore_mem>>
      %190 = tpu.memref_squeeze %189 : memref<1x!tpu.dma_semaphore, #tpu.memory_space<semaphore_mem>> -> memref<!tpu.dma_semaphore, #tpu.memory_space<semaphore_mem>>
      tpu.enqueue_dma source(%186 : memref<1x128xf32, #tpu.memory_space<any>>) target(%188 : memref<1x128xf32, #tpu.memory_space<vmem>>) target_semaphore(%190 : memref<!tpu.dma_semaphore, #tpu.memory_space<semaphore_mem>>)
      %c6_i32_95 = arith.constant 6 : i32
      %191 = arith.addi %124, %c6_i32_95 : i32
      %192 = arith.index_cast %191 : i32 to index
      %193 = memref.load %arg1[%192] : memref<16xi32, #tpu.memory_space<smem>>
      %c8_i32_96 = arith.constant 8 : i32
      %194 = arith.muli %1, %c8_i32_96 : i32
      %c7_i32_97 = arith.constant 7 : i32
      %195 = arith.andi %c6_i32_95, %c7_i32_97 : i32
      %196 = arith.addi %194, %195 : i32
      %c0_i32_98 = arith.constant 0 : i32
      %197 = tpu.memref_slice %arg6[%193, %c0_i32_98] : memref<50x128xf32, #tpu.memory_space<any>> -> memref<1x128xf32, #tpu.memory_space<any>>
      %c0_i32_99 = arith.constant 0 : i32
      %198 = tpu.memref_slice %arg8[%1, %c6_i32_95, %c0_i32_99] : memref<2x8x128xf32, #tpu.memory_space<vmem>> -> memref<1x1x128xf32, #tpu.memory_space<vmem>>
      %199 = tpu.memref_squeeze %198 : memref<1x1x128xf32, #tpu.memory_space<vmem>> -> memref<1x128xf32, #tpu.memory_space<vmem>>
      %200 = tpu.memref_slice %arg9[%196] : memref<16x!tpu.dma_semaphore, #tpu.memory_space<semaphore_mem>> -> memref<1x!tpu.dma_semaphore, #tpu.memory_space<semaphore_mem>>
      %201 = tpu.memref_squeeze %200 : memref<1x!tpu.dma_semaphore, #tpu.memory_space<semaphore_mem>> -> memref<!tpu.dma_semaphore, #tpu.memory_space<semaphore_mem>>
      tpu.enqueue_dma source(%197 : memref<1x128xf32, #tpu.memory_space<any>>) target(%199 : memref<1x128xf32, #tpu.memory_space<vmem>>) target_semaphore(%201 : memref<!tpu.dma_semaphore, #tpu.memory_space<semaphore_mem>>)
      %c7_i32_100 = arith.constant 7 : i32
      %202 = arith.addi %124, %c7_i32_100 : i32
      %203 = arith.index_cast %202 : i32 to index
      %204 = memref.load %arg1[%203] : memref<16xi32, #tpu.memory_space<smem>>
      %c8_i32_101 = arith.constant 8 : i32
      %205 = arith.muli %1, %c8_i32_101 : i32
      %c7_i32_102 = arith.constant 7 : i32
      %206 = arith.andi %c7_i32_100, %c7_i32_102 : i32
      %207 = arith.addi %205, %206 : i32
      %c0_i32_103 = arith.constant 0 : i32
      %208 = tpu.memref_slice %arg6[%204, %c0_i32_103] : memref<50x128xf32, #tpu.memory_space<any>> -> memref<1x128xf32, #tpu.memory_space<any>>
      %c0_i32_104 = arith.constant 0 : i32
      %209 = tpu.memref_slice %arg8[%1, %c7_i32_100, %c0_i32_104] : memref<2x8x128xf32, #tpu.memory_space<vmem>> -> memref<1x1x128xf32, #tpu.memory_space<vmem>>
      %210 = tpu.memref_squeeze %209 : memref<1x1x128xf32, #tpu.memory_space<vmem>> -> memref<1x128xf32, #tpu.memory_space<vmem>>
      %211 = tpu.memref_slice %arg9[%207] : memref<16x!tpu.dma_semaphore, #tpu.memory_space<semaphore_mem>> -> memref<1x!tpu.dma_semaphore, #tpu.memory_space<semaphore_mem>>
      %212 = tpu.memref_squeeze %211 : memref<1x!tpu.dma_semaphore, #tpu.memory_space<semaphore_mem>> -> memref<!tpu.dma_semaphore, #tpu.memory_space<semaphore_mem>>
      tpu.enqueue_dma source(%208 : memref<1x128xf32, #tpu.memory_space<any>>) target(%210 : memref<1x128xf32, #tpu.memory_space<vmem>>) target_semaphore(%212 : memref<!tpu.dma_semaphore, #tpu.memory_space<semaphore_mem>>)
      %c8_i32_105 = arith.constant 8 : i32
    } else {
    }
    %c0_i32_11 = arith.constant 0 : i32
    %c8_i32 = arith.constant 8 : i32
    %32 = arith.muli %0, %c8_i32 : i32
    %c7_i32 = arith.constant 7 : i32
    %33 = arith.andi %c0_i32_11, %c7_i32 : i32
    %34 = arith.addi %32, %33 : i32
    %c0_i32_12 = arith.constant 0 : i32
    %c0_i32_13 = arith.constant 0 : i32
    %35 = tpu.memref_slice %arg6[%c0_i32_12, %c0_i32_13] : memref<50x128xf32, #tpu.memory_space<any>> -> memref<1x128xf32, #tpu.memory_space<any>>
    %c0_i32_14 = arith.constant 0 : i32
    %36 = tpu.memref_slice %arg8[%0, %c0_i32_11, %c0_i32_14] : memref<2x8x128xf32, #tpu.memory_space<vmem>> -> memref<1x1x128xf32, #tpu.memory_space<vmem>>
    %37 = tpu.memref_squeeze %36 : memref<1x1x128xf32, #tpu.memory_space<vmem>> -> memref<1x128xf32, #tpu.memory_space<vmem>>
    %38 = tpu.memref_slice %arg9[%34] : memref<16x!tpu.dma_semaphore, #tpu.memory_space<semaphore_mem>> -> memref<1x!tpu.dma_semaphore, #tpu.memory_space<semaphore_mem>>
    %39 = tpu.memref_squeeze %38 : memref<1x!tpu.dma_semaphore, #tpu.memory_space<semaphore_mem>> -> memref<!tpu.dma_semaphore, #tpu.memory_space<semaphore_mem>>
    tpu.wait_dma2 semaphore(%39 : memref<!tpu.dma_semaphore, #tpu.memory_space<semaphore_mem>>) src(%35 : memref<1x128xf32, #tpu.memory_space<any>>) dst(%37 : memref<1x128xf32, #tpu.memory_space<vmem>>)
    %c1_i32_15 = arith.constant 1 : i32
    %c8_i32_16 = arith.constant 8 : i32
    %40 = arith.muli %0, %c8_i32_16 : i32
    %c7_i32_17 = arith.constant 7 : i32
    %41 = arith.andi %c1_i32_15, %c7_i32_17 : i32
    %42 = arith.addi %40, %41 : i32
    %c0_i32_18 = arith.constant 0 : i32
    %c0_i32_19 = arith.constant 0 : i32
    %43 = tpu.memref_slice %arg6[%c0_i32_18, %c0_i32_19] : memref<50x128xf32, #tpu.memory_space<any>> -> memref<1x128xf32, #tpu.memory_space<any>>
    %c0_i32_20 = arith.constant 0 : i32
    %44 = tpu.memref_slice %arg8[%0, %c1_i32_15, %c0_i32_20] : memref<2x8x128xf32, #tpu.memory_space<vmem>> -> memref<1x1x128xf32, #tpu.memory_space<vmem>>
    %45 = tpu.memref_squeeze %44 : memref<1x1x128xf32, #tpu.memory_space<vmem>> -> memref<1x128xf32, #tpu.memory_space<vmem>>
    %46 = tpu.memref_slice %arg9[%42] : memref<16x!tpu.dma_semaphore, #tpu.memory_space<semaphore_mem>> -> memref<1x!tpu.dma_semaphore, #tpu.memory_space<semaphore_mem>>
    %47 = tpu.memref_squeeze %46 : memref<1x!tpu.dma_semaphore, #tpu.memory_space<semaphore_mem>> -> memref<!tpu.dma_semaphore, #tpu.memory_space<semaphore_mem>>
    tpu.wait_dma2 semaphore(%47 : memref<!tpu.dma_semaphore, #tpu.memory_space<semaphore_mem>>) src(%43 : memref<1x128xf32, #tpu.memory_space<any>>) dst(%45 : memref<1x128xf32, #tpu.memory_space<vmem>>)
    %c2_i32_21 = arith.constant 2 : i32
    %c8_i32_22 = arith.constant 8 : i32
    %48 = arith.muli %0, %c8_i32_22 : i32
    %c7_i32_23 = arith.constant 7 : i32
    %49 = arith.andi %c2_i32_21, %c7_i32_23 : i32
    %50 = arith.addi %48, %49 : i32
    %c0_i32_24 = arith.constant 0 : i32
    %c0_i32_25 = arith.constant 0 : i32
    %51 = tpu.memref_slice %arg6[%c0_i32_24, %c0_i32_25] : memref<50x128xf32, #tpu.memory_space<any>> -> memref<1x128xf32, #tpu.memory_space<any>>
    %c0_i32_26 = arith.constant 0 : i32
    %52 = tpu.memref_slice %arg8[%0, %c2_i32_21, %c0_i32_26] : memref<2x8x128xf32, #tpu.memory_space<vmem>> -> memref<1x1x128xf32, #tpu.memory_space<vmem>>
    %53 = tpu.memref_squeeze %52 : memref<1x1x128xf32, #tpu.memory_space<vmem>> -> memref<1x128xf32, #tpu.memory_space<vmem>>
    %54 = tpu.memref_slice %arg9[%50] : memref<16x!tpu.dma_semaphore, #tpu.memory_space<semaphore_mem>> -> memref<1x!tpu.dma_semaphore, #tpu.memory_space<semaphore_mem>>
    %55 = tpu.memref_squeeze %54 : memref<1x!tpu.dma_semaphore, #tpu.memory_space<semaphore_mem>> -> memref<!tpu.dma_semaphore, #tpu.memory_space<semaphore_mem>>
    tpu.wait_dma2 semaphore(%55 : memref<!tpu.dma_semaphore, #tpu.memory_space<semaphore_mem>>) src(%51 : memref<1x128xf32, #tpu.memory_space<any>>) dst(%53 : memref<1x128xf32, #tpu.memory_space<vmem>>)
    %c3_i32 = arith.constant 3 : i32
    %c8_i32_27 = arith.constant 8 : i32
    %56 = arith.muli %0, %c8_i32_27 : i32
    %c7_i32_28 = arith.constant 7 : i32
    %57 = arith.andi %c3_i32, %c7_i32_28 : i32
    %58 = arith.addi %56, %57 : i32
    %c0_i32_29 = arith.constant 0 : i32
    %c0_i32_30 = arith.constant 0 : i32
    %59 = tpu.memref_slice %arg6[%c0_i32_29, %c0_i32_30] : memref<50x128xf32, #tpu.memory_space<any>> -> memref<1x128xf32, #tpu.memory_space<any>>
    %c0_i32_31 = arith.constant 0 : i32
    %60 = tpu.memref_slice %arg8[%0, %c3_i32, %c0_i32_31] : memref<2x8x128xf32, #tpu.memory_space<vmem>> -> memref<1x1x128xf32, #tpu.memory_space<vmem>>
    %61 = tpu.memref_squeeze %60 : memref<1x1x128xf32, #tpu.memory_space<vmem>> -> memref<1x128xf32, #tpu.memory_space<vmem>>
    %62 = tpu.memref_slice %arg9[%58] : memref<16x!tpu.dma_semaphore, #tpu.memory_space<semaphore_mem>> -> memref<1x!tpu.dma_semaphore, #tpu.memory_space<semaphore_mem>>
    %63 = tpu.memref_squeeze %62 : memref<1x!tpu.dma_semaphore, #tpu.memory_space<semaphore_mem>> -> memref<!tpu.dma_semaphore, #tpu.memory_space<semaphore_mem>>
    tpu.wait_dma2 semaphore(%63 : memref<!tpu.dma_semaphore, #tpu.memory_space<semaphore_mem>>) src(%59 : memref<1x128xf32, #tpu.memory_space<any>>) dst(%61 : memref<1x128xf32, #tpu.memory_space<vmem>>)
    %c4_i32 = arith.constant 4 : i32
    %c8_i32_32 = arith.constant 8 : i32
    %64 = arith.muli %0, %c8_i32_32 : i32
    %c7_i32_33 = arith.constant 7 : i32
    %65 = arith.andi %c4_i32, %c7_i32_33 : i32
    %66 = arith.addi %64, %65 : i32
    %c0_i32_34 = arith.constant 0 : i32
    %c0_i32_35 = arith.constant 0 : i32
    %67 = tpu.memref_slice %arg6[%c0_i32_34, %c0_i32_35] : memref<50x128xf32, #tpu.memory_space<any>> -> memref<1x128xf32, #tpu.memory_space<any>>
    %c0_i32_36 = arith.constant 0 : i32
    %68 = tpu.memref_slice %arg8[%0, %c4_i32, %c0_i32_36] : memref<2x8x128xf32, #tpu.memory_space<vmem>> -> memref<1x1x128xf32, #tpu.memory_space<vmem>>
    %69 = tpu.memref_squeeze %68 : memref<1x1x128xf32, #tpu.memory_space<vmem>> -> memref<1x128xf32, #tpu.memory_space<vmem>>
    %70 = tpu.memref_slice %arg9[%66] : memref<16x!tpu.dma_semaphore, #tpu.memory_space<semaphore_mem>> -> memref<1x!tpu.dma_semaphore, #tpu.memory_space<semaphore_mem>>
    %71 = tpu.memref_squeeze %70 : memref<1x!tpu.dma_semaphore, #tpu.memory_space<semaphore_mem>> -> memref<!tpu.dma_semaphore, #tpu.memory_space<semaphore_mem>>
    tpu.wait_dma2 semaphore(%71 : memref<!tpu.dma_semaphore, #tpu.memory_space<semaphore_mem>>) src(%67 : memref<1x128xf32, #tpu.memory_space<any>>) dst(%69 : memref<1x128xf32, #tpu.memory_space<vmem>>)
    %c5_i32 = arith.constant 5 : i32
    %c8_i32_37 = arith.constant 8 : i32
    %72 = arith.muli %0, %c8_i32_37 : i32
    %c7_i32_38 = arith.constant 7 : i32
    %73 = arith.andi %c5_i32, %c7_i32_38 : i32
    %74 = arith.addi %72, %73 : i32
    %c0_i32_39 = arith.constant 0 : i32
    %c0_i32_40 = arith.constant 0 : i32
    %75 = tpu.memref_slice %arg6[%c0_i32_39, %c0_i32_40] : memref<50x128xf32, #tpu.memory_space<any>> -> memref<1x128xf32, #tpu.memory_space<any>>
    %c0_i32_41 = arith.constant 0 : i32
    %76 = tpu.memref_slice %arg8[%0, %c5_i32, %c0_i32_41] : memref<2x8x128xf32, #tpu.memory_space<vmem>> -> memref<1x1x128xf32, #tpu.memory_space<vmem>>
    %77 = tpu.memref_squeeze %76 : memref<1x1x128xf32, #tpu.memory_space<vmem>> -> memref<1x128xf32, #tpu.memory_space<vmem>>
    %78 = tpu.memref_slice %arg9[%74] : memref<16x!tpu.dma_semaphore, #tpu.memory_space<semaphore_mem>> -> memref<1x!tpu.dma_semaphore, #tpu.memory_space<semaphore_mem>>
    %79 = tpu.memref_squeeze %78 : memref<1x!tpu.dma_semaphore, #tpu.memory_space<semaphore_mem>> -> memref<!tpu.dma_semaphore, #tpu.memory_space<semaphore_mem>>
    tpu.wait_dma2 semaphore(%79 : memref<!tpu.dma_semaphore, #tpu.memory_space<semaphore_mem>>) src(%75 : memref<1x128xf32, #tpu.memory_space<any>>) dst(%77 : memref<1x128xf32, #tpu.memory_space<vmem>>)
    %c6_i32 = arith.constant 6 : i32
    %c8_i32_42 = arith.constant 8 : i32
    %80 = arith.muli %0, %c8_i32_42 : i32
    %c7_i32_43 = arith.constant 7 : i32
    %81 = arith.andi %c6_i32, %c7_i32_43 : i32
    %82 = arith.addi %80, %81 : i32
    %c0_i32_44 = arith.constant 0 : i32
    %c0_i32_45 = arith.constant 0 : i32
    %83 = tpu.memref_slice %arg6[%c0_i32_44, %c0_i32_45] : memref<50x128xf32, #tpu.memory_space<any>> -> memref<1x128xf32, #tpu.memory_space<any>>
    %c0_i32_46 = arith.constant 0 : i32
    %84 = tpu.memref_slice %arg8[%0, %c6_i32, %c0_i32_46] : memref<2x8x128xf32, #tpu.memory_space<vmem>> -> memref<1x1x128xf32, #tpu.memory_space<vmem>>
    %85 = tpu.memref_squeeze %84 : memref<1x1x128xf32, #tpu.memory_space<vmem>> -> memref<1x128xf32, #tpu.memory_space<vmem>>
    %86 = tpu.memref_slice %arg9[%82] : memref<16x!tpu.dma_semaphore, #tpu.memory_space<semaphore_mem>> -> memref<1x!tpu.dma_semaphore, #tpu.memory_space<semaphore_mem>>
    %87 = tpu.memref_squeeze %86 : memref<1x!tpu.dma_semaphore, #tpu.memory_space<semaphore_mem>> -> memref<!tpu.dma_semaphore, #tpu.memory_space<semaphore_mem>>
    tpu.wait_dma2 semaphore(%87 : memref<!tpu.dma_semaphore, #tpu.memory_space<semaphore_mem>>) src(%83 : memref<1x128xf32, #tpu.memory_space<any>>) dst(%85 : memref<1x128xf32, #tpu.memory_space<vmem>>)
    %c7_i32_47 = arith.constant 7 : i32
    %c8_i32_48 = arith.constant 8 : i32
    %88 = arith.muli %0, %c8_i32_48 : i32
    %c7_i32_49 = arith.constant 7 : i32
    %89 = arith.andi %c7_i32_47, %c7_i32_49 : i32
    %90 = arith.addi %88, %89 : i32
    %c0_i32_50 = arith.constant 0 : i32
    %c0_i32_51 = arith.constant 0 : i32
    %91 = tpu.memref_slice %arg6[%c0_i32_50, %c0_i32_51] : memref<50x128xf32, #tpu.memory_space<any>> -> memref<1x128xf32, #tpu.memory_space<any>>
    %c0_i32_52 = arith.constant 0 : i32
    %92 = tpu.memref_slice %arg8[%0, %c7_i32_47, %c0_i32_52] : memref<2x8x128xf32, #tpu.memory_space<vmem>> -> memref<1x1x128xf32, #tpu.memory_space<vmem>>
    %93 = tpu.memref_squeeze %92 : memref<1x1x128xf32, #tpu.memory_space<vmem>> -> memref<1x128xf32, #tpu.memory_space<vmem>>
    %94 = tpu.memref_slice %arg9[%90] : memref<16x!tpu.dma_semaphore, #tpu.memory_space<semaphore_mem>> -> memref<1x!tpu.dma_semaphore, #tpu.memory_space<semaphore_mem>>
    %95 = tpu.memref_squeeze %94 : memref<1x!tpu.dma_semaphore, #tpu.memory_space<semaphore_mem>> -> memref<!tpu.dma_semaphore, #tpu.memory_space<semaphore_mem>>
    tpu.wait_dma2 semaphore(%95 : memref<!tpu.dma_semaphore, #tpu.memory_space<semaphore_mem>>) src(%91 : memref<1x128xf32, #tpu.memory_space<any>>) dst(%93 : memref<1x128xf32, #tpu.memory_space<vmem>>)
    %c8_i32_53 = arith.constant 8 : i32
    %96 = arith.index_cast %0 : i32 to index
    %c0_54 = arith.constant 0 : index
    %c0_55 = arith.constant 0 : index
    %97 = vector.load %arg8[%96, %c0_54, %c0_55] : memref<2x8x128xf32, #tpu.memory_space<vmem>>, vector<1x8x128xf32>
    %98 = vector.shape_cast %97 : vector<1x8x128xf32> to vector<8x128xf32>
    %99 = arith.addf %98, %25 : vector<8x128xf32>
    %cst_56 = arith.constant dense<0.000000e+00> : vector<8xf32>
    %100 = vector.multi_reduction <add>, %99, %cst_56 [1] : vector<8x128xf32> to vector<8xf32>
    %101 = vector.shape_cast %100 : vector<8xf32> to vector<8x1xf32>
    %cst_57 = arith.constant 3.125000e-02 : f32
    %102 = vector.broadcast %cst_57 : f32 to vector<8x1xf32>
    %103 = arith.mulf %101, %102 : vector<8x1xf32>
    %104 = arith.mulf %99, %99 : vector<8x128xf32>
    %cst_58 = arith.constant dense<0.000000e+00> : vector<8xf32>
    %105 = vector.multi_reduction <add>, %104, %cst_58 [1] : vector<8x128xf32> to vector<8xf32>
    %106 = vector.shape_cast %105 : vector<8xf32> to vector<8x1xf32>
    %cst_59 = arith.constant 3.125000e-02 : f32
    %107 = vector.broadcast %cst_59 : f32 to vector<8x1xf32>
    %108 = arith.mulf %106, %107 : vector<8x1xf32>
    %109 = arith.mulf %103, %103 : vector<8x1xf32>
    %110 = arith.subf %108, %109 : vector<8x1xf32>
    %111 = vector.broadcast %103 : vector<8x1xf32> to vector<8x128xf32>
    %112 = arith.subf %99, %111 : vector<8x128xf32>
    %cst_60 = arith.constant 9.99999996E-13 : f32
    %113 = vector.broadcast %cst_60 : f32 to vector<8x1xf32>
    %114 = arith.addf %110, %113 : vector<8x1xf32>
    %115 = math.rsqrt %114 : vector<8x1xf32>
    %116 = vector.broadcast %115 : vector<8x1xf32> to vector<8x128xf32>
    %117 = arith.mulf %112, %116 : vector<8x128xf32>
    %118 = vector.broadcast %26 : vector<1x128xf32> to vector<8x128xf32>
    %119 = arith.mulf %117, %118 : vector<8x128xf32>
    %120 = vector.broadcast %27 : vector<1x128xf32> to vector<8x128xf32>
    %121 = arith.addf %119, %120 : vector<8x128xf32>
    %c0_61 = arith.constant 0 : index
    %c0_62 = arith.constant 0 : index
    %122 = vector.load %arg7[%c0_61, %c0_62] : memref<8x128xf32, #tpu.memory_space<vmem>>, vector<8x128xf32>
    tpu.vector_store %arg7[%c0_61, %c0_62], %121 {strides = array<i32>} : memref<8x128xf32, #tpu.memory_space<vmem>>, vector<8x128xf32>,
    return
  }
  func.func @transform_0(%arg0: i32, %arg1: memref<16xi32, #tpu.memory_space<smem>>) -> (i32, i32) {
    %c0_i32 = arith.constant 0 : i32
    %c0_i32_0 = arith.constant 0 : i32
    return %arg0, %c0_i32 : i32, i32
  }
  func.func @transform_1(%arg0: i32, %arg1: memref<16xi32, #tpu.memory_space<smem>>) -> (i32, i32) {
    %c0_i32 = arith.constant 0 : i32
    %c0_i32_0 = arith.constant 0 : i32
    %c0_i32_1 = arith.constant 0 : i32
    return %c0_i32, %c0_i32_0 : i32, i32
  }
  func.func @transform_2(%arg0: i32, %arg1: memref<16xi32, #tpu.memory_space<smem>>) -> (i32, i32) {
    %c0_i32 = arith.constant 0 : i32
    %c0_i32_0 = arith.constant 0 : i32
    %c0_i32_1 = arith.constant 0 : i32
    return %c0_i32, %c0_i32_0 : i32, i32
  }
  func.func @transform_3(%arg0: i32, %arg1: memref<16xi32, #tpu.memory_space<smem>>) -> (i32, i32) {
    %c0_i32 = arith.constant 0 : i32
    %c0_i32_0 = arith.constant 0 : i32
    %c0_i32_1 = arith.constant 0 : i32
    return %c0_i32, %c0_i32_0 : i32, i32
  }
  func.func @transform_5(%arg0: i32, %arg1: memref<16xi32, #tpu.memory_space<smem>>) -> (i32, i32) {
    %c0_i32 = arith.constant 0 : i32
    %c0_i32_0 = arith.constant 0 : i32
    return %arg0, %c0_i32 : i32, i32
  }
}

</mosaic_0001>

<bundles_post_ra>
// kernel: tpu_custom_call.1
= control target key start
LH: loop header
LB: loop body
LE: loop exit
PB: predicated region body
PF: predicated region fallthrough
CT: control target
= control target key end

     0   :  { %s2415_s0 = inlined_call_operand.vmem [shape: s32[16], index: 0, kind: input, shape index: {}]   ;;  %s2416_s1 = inlined_call_operand.vmem [shape: s32[16,4], index: 1, kind: input, shape index: {}]   ;;  %s2417_s2 = inlined_call_operand.hbm [shape: f32[64,128], index: 2, kind: input, shape index: {}]   ;;  %s2418_s3 = inlined_call_operand.vmem [shape: f32[1,128], index: 3, kind: input, shape index: {}]   ;;  %s2419_s4 = inlined_call_operand.vmem [shape: f32[1,128], index: 4, kind: input, shape index: {}]   ;;  %s2420_s5 = inlined_call_operand.hbm [shape: f32[50,128], index: 5, kind: input, shape index: {}]   ;;  %s2421_s6 = inlined_call_operand.hbm [shape: f32[16,128], index: 6, kind: output, shape index: {}]  }
   0x1   :  { %2432 = sst [smem:[#allocation68_spill]] %s2416_s1  ;;  %s11_s23 = sshll.u32 %s2415_s0, 4  ;;  %s12_s23 = int_to_ptr.vmem [resolvable:$true] %s11_s23 }
   0x2   :  { %2433 = sst [smem:[#allocation69_spill]] %s2417_s2  ;;  %s1209_s24 = scalar_lea.vmem %s12_s23, 16 }
   0x3   :  { %2434 = sst [smem:[#allocation70_spill]] %s2418_s3  ;;  %p1210_p0 = scmp.ne.s32.totalorder %s12_s23, %s1209_s24 }
   0x4   :  { %2435 = sst [smem:[#allocation71_spill]] %s2419_s4  ;;  %p1214_p1 = scmp.lt.s32.totalorder %s12_s23, %s12_s23 }
   0x5   :  { %p1215_p2 = scmp.lt.s32.totalorder %s1209_s24, %s1209_s24 }
   0x7   :  { %p1216_p3 = por %p1215_p2, %p1214_p1 }
   0x9   :  { %p1217_p4 = pnand %p1216_p3, %p1210_p0 }
   0xb   :  { %1220 = shalt.err (!%p1217_p4)  }
   0xc   :  { %s1783_s25 = smov [#allocation5]  }
   0xd   :  { %14 = dma.vmem_to_smem %s12_s23, 16, %s1783_s25, [#allocation4] }
   0xe   :  { %1741 = dma.done.wait [#allocation4], 16 }
   0xf   :  { %1742 = vsyncadd [#allocation4], 4294967280 }
  0x10   :  { %16 = sfence }
  0x11   :  { %17 = vsyncpa [#allocation7], 0 }
  0x12   :  { %18 = vsyncpa [#allocation8], 0 }
  0x13   :  { %20 = vsyncpa [#allocation8 + $0x1], 0  ;;  %s1841_s26 = smov 0   ;;  %s1843_s27 = smov 0  }
  0x14   :  { %s1845_s0 = smov 0   ;;  %s1847_s28 = smov 0  }
  0x15 LB: > { %2436 = sst [smem:[#allocation63_spill]] %s1769_s26  ;;  %s1862_s29 = sadd.s32 4294967295, %s1781_s28   ;;  %s1781_s28 = sphi %s1847_s28, %s2483_s28   ;;  %s1777_s0 = sphi %s1845_s0, %s2485_s0   ;;  %s1773_s27 = sphi %s1843_s27, %s2487_s27   ;;  %s1769_s26 = sphi %s1841_s26, %s2486_s26  }
  0x16   : > { %2437 = sst [smem:[#allocation64_spill]] %s1777_s0  ;;  %s975_s30 = sadd.s32 4294967294, %s1781_s28  }
  0x17   : > { %s1866_s7 = sadd.s32 1, %s1781_s28   ;;  %s122_s8 = sadd.s32 1, %s1777_s0 }
  0x18   : > { %2438 = sst [smem:[#allocation65_spill]] %s1866_s7  ;;  %s119_s9 = ssub.s32 %s1781_s28, %s1866_s7 }
  0x19   : > { %p132_p5 = scmp.ne.s32.totalorder %s1777_s0, %s1773_s27  ;;  %p120_p6 = scmp.eq.s32.totalorder %s119_s9, 0 }
  0x1a   : > { %p133_p7 = scmp.eq.s32.totalorder %s1862_s29, 1  ;;  %p138_p8 = scmp.ne.s32.totalorder %s1773_s27, %s1769_s26 }
  0x1b   : > { %p139_p9 = scmp.eq.s32.totalorder %s975_s30, 1  ;;  %p976_p12 = scmp.ge.s32.totalorder %s1781_s28, 1 }
  0x1c   : > { %s1877_s10 = scalar_select %p120_p6, %s1777_s0, %s122_s8  }
  0x1d   : > { %p1879_p10 = por %p133_p7, %p132_p5  ;;  %p1883_p11 = por %p139_p9, %p138_p8 }
  0x1e   : > { %2439 = sst [smem:[#allocation66_spill]] %s1877_s10  ;;  %p146_p13 = scmp.lt.s32.totalorder %s1781_s28, 3 }
  0x1f   : > { %s2440_s11 = scalar_select %p1879_p10, 1, 0 }
  0x20   : > { %s2441_s12 = scalar_select %p1883_p11, 1, 0 }
  0x21   : > { %p2422_p0 = scmp.eq.s32.totalorder %s1862_s29, 0  ;;  %p1890_p1 = pnand %p976_p12, %p146_p13 }
  0x22   : > { %2442 = sst [smem:[#allocation67_spill]] %s2441_s12  ;;  %s1784_s14 = smov [#allocation6]  }
  0x23   : > { %s2443_s13 = scalar_select %p1890_p1, 1, 0 }
  0x24   : > { %s158_s15 = sshll.u32 %s1784_s14, 4  ;;  %p1138_p2 = pneg %p1890_p1  ;;  %s159_s15 = int_to_ptr.vmem [resolvable:$true] %s158_s15 }
  0x25   : > { %s2445_s2 = sld [smem:[#allocation69_spill]] }
  0x26   : > { %p1898_p3 = pnand %p2422_p0, %p1138_p2 }
  0x28   : > { %p1223_p5 = pneg %p1898_p3 }
  0x2b   : > { %s1221_s19 = scalar_lea.hbm %s2445_s2, 1024 }
  0x2c   : > { %p1222_p4 = scmp.ne.s32.totalorder %s2445_s2, %s1221_s19  ;;  %p1228_p8 = scmp.lt.u32.totalorder %s1221_s19, %s2445_s2 }
  0x2e   : > { %p1224_p6 = pnand %p1223_p5, %p1222_p4 }
  0x30   : > { %p1225_p7 = pneg %p1224_p6 }
  0x32   : > { %p1230_p9 = pnand %p1228_p8, %p1225_p7 }
  0x34   : > { %1233 = shalt.err (!%p1230_p9)
}
  0x35   : > { %s1234_s24 = scalar_lea.vmem %s159_s15, 1024  ;;  %p1242_p0 = scmp.lt.s32.totalorder %s159_s15, %s159_s15 }
  0x36   : > { %p1235_p12 = scmp.ne.s32.totalorder %s159_s15, %s1234_s24  ;;  %p1243_p11 = scmp.lt.s32.totalorder %s1234_s24, %s1234_s24 }
  0x38   : > { %p1237_p13 = pnand %p1235_p12, %p1223_p5  ;;  %p1244_p10 = por %p1243_p11, %p1242_p0 }
  0x3a   : > { %p1238_p2 = pneg %p1237_p13 }
  0x3c   : > { %p1245_p1 = pnand %p1244_p10, %p1238_p2 }
  0x3e   : > { %1248 = shalt.err (!%p1245_p1)
}
  0x3f   : > { %s1785_s25 = smov 128   ;;  %s1786_s30 = smov 8  }
  0x40   : > { %1141 = dma.hbm_to_vmem [thread:$0]  (!%p1898_p3), %s2445_s2, 1024, %s159_s15, [#allocation7], %s1785_s25, %s1785_s25, %s1786_s30  }
  0x41   : > { %p2446_p4 = scmp.ne.s32.totalorder %s2443_s13, 0 }
  0x42   : > { %p2447_p6 = scmp.eq.s32.totalorder (!%p2446_p4), %s1862_s29, 0 }
  0x43   : > { %187 = sbr.rel (%p2446_p4) target bundleno = 868 (0x364), region = 36 }
  0x4a   : > { %1744 = dma.done.wait (%p2447_p6), [#allocation7], 1024   ;;  %p2448_p5 = pmov %p2447_p6 }
  0x4b   : > { %p212_p10 = scmp.lt.s32.totalorder %s1862_s29, 1  ;;  %v1787_v0 = vmov 0   ;;  %v1788_v1 = vmov 2   ;;  %v1789_v2 = vmov 0.0|0.0   ;;  %s2449_s1 = sld [smem:[#allocation68_spill]]  ;;  %v372_v6 = vld [vmem:[#allocation6] sm:$0xff] }
  0x4c   : > { %1746 = vsyncadd (%p2448_p5), [#allocation7], 4294966272  ;;  %1202 = vset.pattern.permute.xlu0 %v1787_v0  ;;  %1204 = vset.pattern.permute.xlu1 %v1788_v1  ;;  %s2450_s3 = sld [smem:[#allocation70_spill]]  ;;  %s2451_s4 = sld [smem:[#allocation71_spill]]  ;;  %v373_v7 = vld [vmem:[#allocation6 + $0x8] sm:$0xff]  ;;  %v374_v8 = vld [vmem:[#allocation6 + $0x10] sm:$0xff] }
  0x4d   : > { %s213_s14 = scalar_select %p212_p10, %s1862_s29, 1  ;;  %1086 = vmatprep.subr.bf16.mxu0 %v1789_v2  ;;  %v1087_v9 = vpack.c.bf16 %v373_v7, %v372_v6  ;;  %v375_v10 = vld [vmem:[#allocation6 + $0x18] sm:$0xff]  ;;  %v1790_v12 = vmov 1   ;;  %v1791_v13 = vmov 3   ;;  %v376_v14 = vld [vmem:[#allocation6 + $0x20] sm:$0xff]  ;;  %v377_v15 = vld [vmem:[#allocation6 + $0x28] sm:$0xff] }
  0x4e   : > { %v1090_v11 = vpack.c.bf16 %v375_v10, %v374_v8  ;;  %v1093_v16 = vpack.c.bf16 %v377_v15, %v376_v14  ;;  %v378_v17 = vld [vmem:[#allocation6 + $0x30] sm:$0xff]  ;;  %v379_v18 = vld [vmem:[#allocation6 + $0x38] sm:$0xff]  ;;  %vm1792_vm0 = vmmov 0   ;;  %v1793_v19 = vmov 0.0   ;;  %s2425_s22 = sand.u32 1, %s1773_s27   ;;  %s222_s23 = sld [smem:[#allocation5]] }
  0x4f   : > { %s982_s15 = sshll.u32 %s213_s14, 3  ;;  %1088 = vmatpush3.bf16.msra.mxu0 %v1087_v9  ;;  %1083 = vmatprep.mubr.msk.f32.mxu0 %vm1792_vm0, %v1793_v19  ;;  %v1096_v20 = vpack.c.bf16 %v379_v18, %v378_v17  ;;  %s1943_s24 = sshll.u32 %s2425_s22, 3 }
  0x50   : > { %1089 = vmatprep.subr.bf16.mxu0 %v1789_v2  ;;  %s1794_s25 = smov [#allocation2]   ;;  %s1947_s8 = sld [smem:[#allocation5 + $0x1]] }
  0x51   : > { %s215_s17 = scalar_lea.vmem %s2449_s1, %s982_s15  ;;  %s232_s30 = sshll.u32 %s1794_s25, 4  ;;  %s1945_s30 = int_to_ptr.vmem [resolvable:$true] %s232_s30 }
  0x52   : > { %v1932_v3 = vld [vmem:[%s2450_s3] ss:$0 sm:$0xff]  ;;  %s1949_s9 = sld [smem:[#allocation5 + $0x2]]  ;;  %s1795_s14 = smov [#allocation2 + $0x1]  }
  0x53   : > { %v1937_v4 = vld [vmem:[%s2451_s4] ss:$0 sm:$0xff]  ;;  %1091 = vmatpush3.bf16.msra.mxu0 %v1090_v11  ;;  %s248_s15 = sshll.u32 %s1795_s14, 4  ;;  %s1796_s19 = smov [#allocation2 + $0x2]   ;;  %s1951_s15 = int_to_ptr.vmem [resolvable:$true] %s248_s15 }
  0x54   : > { %v350_v5 = vld [vmem:[%s215_s17] sm:$0xff]  ;;  %1092 = vmatprep.subr.bf16.mxu0 %v1789_v2  ;;  %s984_s16 = sshll.u32 %s222_s23, 4  ;;  %s264_s20 = sshll.u32 %s1796_s19, 4  ;;  %s1981_s20 = int_to_ptr.vmem [resolvable:$true] %s264_s20 }
  0x55   : > { %352 = vperm.xlu0 %1202, %v350_v5   ;;  %361 = vperm.xlu1 %1204, %v350_v5   ;;  %s224_s18 = scalar_lea.hbm %s2420_s5, %s984_s16  ;;  %p2452_p0 = pmov %p2448_p5 }
  0x56   : > { %s1249_s21 = scalar_lea.hbm %s224_s18, 16  ;;  %s1961_s1 = scalar_lea.hbm %s2420_s5, 896 }
  0x57   : > { %1094 = vmatpush3.bf16.msra.mxu0 %v1093_v16  ;;  %p1250_p11 = scmp.ne.s32.totalorder %s224_s18, %s1249_s21  ;;  %p1254_p7 = scmp.lt.u32.totalorder %s224_s18, %s2420_s5 }
  0x58   : > { %1095 = vmatprep.subr.bf16.mxu0 %v1789_v2  ;;  %p1255_p8 = scmp.lt.u32.totalorder %s1961_s1, %s1249_s21  ;;  %p1257_p12 = scmp.lt.u32.totalorder %s1249_s21, %s224_s18 }
  0x59   : > { %1203 = vset.pattern.permute.xlu0 %v1790_v12  ;;  %1205 = vset.pattern.permute.xlu1 %v1791_v13  ;;  %p1251_p1 = pnand %p1250_p11, %p2452_p0 }
  0x5a   : > { %356 = vperm.xlu0 %1203, %v350_v5   ;;  %366 = vperm.xlu1 %1205, %v350_v5   ;;  %p1256_p9 = por %p1255_p8, %p1254_p7 }
  0x5b   : > { %1097 = vmatpush3.bf16.msra.mxu0 %v1096_v20  ;;  %p1252_p3 = pneg %p1251_p1 }
  0x5c   : > { %p1258_p13 = por %p1257_p12, %p1256_p9 }
  0x5e   : > { %1206 = vset.pattern.permute.xlu0 %v1791_v13  ;;  %p1259_p2 = pnand %p1258_p13, %p1252_p3 }
  0x60   : > { %1262 = shalt.err (!%p1259_p2)  }
  0x61   : > { %s1263_s16 = scalar_lea.vmem %s1945_s30, 16  ;;  %p2453_p6 = pmov %p2452_p0 }
  0x62   : > { %p1264_p4 = scmp.ne.s32.totalorder %s1945_s30, %s1263_s16  ;;  %s1972_s22 = scalar_lea.vmem %s1945_s30, 256 }
  0x63   : > { %p1270_p11 = scmp.lt.s32.totalorder %s1945_s30, %s1945_s30  ;;  %p1271_p0 = scmp.lt.s32.totalorder %s1972_s22, %s1263_s16 }
  0x64   : > { %p1265_p5 = pnand %p1264_p4, %p2453_p6 }
  0x65   : > { %p1272_p1 = por %p1271_p0, %p1270_p11 }
  0x66   : > { %p1266_p10 = pneg %p1265_p5 }
  0x68   : > { %p1273_p7 = pnand %p1272_p1, %p1266_p10 }
  0x6a   : > { %1276 = shalt.err (!%p1273_p7)  }
  0x6b   : > { %p2454_p3 = pmov %p2453_p6  ;;  %s986_s13 = sshll.u32 %s1947_s8, 4 }
  0x6c   : > { %s238_s21 = scalar_lea.hbm %s2420_s5, %s986_s13  ;;  %s988_s25 = sshll.u32 %s1949_s9, 4 }
  0x6d   : > { %1103 = dma.hbm_to_vmem [thread:$0]  (%p2454_p3), %s224_s18, 16, %s1945_s30, [#allocation3] }
  0x6e   : > { %s1277_s14 = scalar_lea.hbm %s238_s21, 16  ;;  %p2455_p9 = pmov %p2454_p3 }
  0x6f   : > { %p1278_p8 = scmp.ne.s32.totalorder %s238_s21, %s1277_s14  ;;  %p1282_p2 = scmp.lt.u32.totalorder %s238_s21, %s2420_s5 }
  0x70   : > { %p1283_p4 = scmp.lt.u32.totalorder %s1961_s1, %s1277_s14  ;;  %p1285_p5 = scmp.lt.u32.totalorder %s1277_s14, %s238_s21 }
  0x71   : > { %p1279_p12 = pnand %p1278_p8, %p2455_p9 }
  0x72   : > { %p1284_p6 = por %p1283_p4, %p1282_p2 }
  0x73   : > { %p1280_p13 = pneg %p1279_p12 }
  0x74   : > { %p1286_p10 = por %p1285_p5, %p1284_p6 }
  0x76   : > { %p1287_p11 = pnand %p1286_p10, %p1280_p13 }
  0x78   : > { %1290 = shalt.err (!%p1287_p11)  }
  0x79   : > { %s1291_s8 = scalar_lea.vmem %s1951_s15, 16  ;;  %p2456_p1 = pmov %p2454_p3 }
  0x7a   : > { %p1292_p0 = scmp.ne.s32.totalorder %s1951_s15, %s1291_s8  ;;  %p1298_p8 = scmp.lt.s32.totalorder %s1951_s15, %s1945_s30 }
  0x7b   : > { %p1299_p9 = scmp.lt.s32.totalorder %s1972_s22, %s1291_s8 }
  0x7c   : > { %p1293_p7 = pnand %p1292_p0, %p2456_p1 }
  0x7d   : > { %p1300_p12 = por %p1299_p9, %p1298_p8 }
  0x7e   : > { %p1294_p3 = pneg %p1293_p7 }
  0x80   : > { %p1301_p2 = pnand %p1300_p12, %p1294_p3 }
  0x82   : > { %1304 = shalt.err (!%p1301_p2)  }
  0x83   : > { %p2457_p4 = pmov %p2456_p1  ;;  %s254_s13 = scalar_lea.hbm %s2420_s5, %s988_s25 }
  0x84   : > { %s2006_s17 = sld [smem:[#allocation5 + $0x3]]  ;;  %s1305_s19 = scalar_lea.hbm %s254_s13, 16 }
  0x85   : > { %1104 = dma.hbm_to_vmem [thread:$0]  (%p2457_p4), %s238_s21, 16, %s1951_s15, [#allocation3 + $0x1] }
  0x86   : > { %p1306_p13 = scmp.ne.s32.totalorder %s254_s13, %s1305_s19  ;;  %p2458_p6 = pmov %p2456_p1 }
  0x87   : > { %p1310_p11 = scmp.lt.u32.totalorder %s254_s13, %s2420_s5  ;;  %p1311_p0 = scmp.lt.u32.totalorder %s1961_s1, %s1305_s19 }
  0x88   : > { %p1307_p5 = pnand %p1306_p13, %p2458_p6  ;;  %p1313_p7 = scmp.lt.u32.totalorder %s1305_s19, %s254_s13 }
  0x89   : > { %p1312_p1 = por %p1311_p0, %p1310_p11 }
  0x8a   : > { %p1308_p10 = pneg %p1307_p5 }
  0x8b   : > { %p1314_p3 = por %p1313_p7, %p1312_p1 }
  0x8d   : > { %p1315_p8 = pnand %p1314_p3, %p1308_p10 }
  0x8f   : > { %1318 = shalt.err (!%p1315_p8)  }
  0x90   : > { %s1319_s15 = scalar_lea.vmem %s1981_s20, 16  ;;  %p2459_p12 = pmov %p2457_p4 }
  0x91   : > { %p1320_p9 = scmp.ne.s32.totalorder %s1981_s20, %s1319_s15  ;;  %p1326_p13 = scmp.lt.s32.totalorder %s1981_s20, %s1945_s30 }
  0x92   : > { %p1327_p6 = scmp.lt.s32.totalorder %s1972_s22, %s1319_s15 }
  0x93   : > { %p1321_p2 = pnand %p1320_p9, %p2459_p12 }
  0x94   : > { %p1328_p5 = por %p1327_p6, %p1326_p13 }
  0x95   : > { %p1322_p4 = pneg %p1321_p2 }
  0x97   : > { %p1329_p0 = pnand %p1328_p5, %p1322_p4 }
  0x99   : > { %1332 = shalt.err (!%p1329_p0)  }
  0x9a   : > { %p2460_p11 = pmov %p2459_p12  ;;  %s2024_s21 = sld [smem:[#allocation5 + $0x4]] }
  0x9b   : > { %s1797_s25 = smov [#allocation2 + $0x3]   ;;  %s1798_s8 = smov [#allocation2 + $0x4]  }
  0x9c   : > { %1105 = dma.hbm_to_vmem [thread:$0]  (%p2460_p11), %s254_s13, 16, %s1981_s20, [#allocation3 + $0x2] }
  0x9d   : > { %s280_s16 = sshll.u32 %s1797_s25, 4  ;;  %s296_s9 = sshll.u32 %s1798_s8, 4  ;;  %s2026_s16 = int_to_ptr.vmem [resolvable:$true] %s280_s16  ;;  %s2028_s9 = int_to_ptr.vmem [resolvable:$true] %s296_s9 }
  0x9e   : > { %s2030_s18 = sld [smem:[#allocation5 + $0x5]]  ;;  %s990_s19 = sshll.u32 %s2006_s17, 4 }
  0x9f   : > { %s270_s15 = scalar_lea.hbm %s2420_s5, %s990_s19  ;;  %s1799_s2 = smov [#allocation2 + $0x5]  }
  0xa0   : > { %s312_s20 = sshll.u32 %s1799_s2, 4  ;;  %s1333_s13 = scalar_lea.hbm %s270_s15, 16  ;;  %s2053_s20 = int_to_ptr.vmem [resolvable:$true] %s312_s20 }
  0xa1   : > { %p1334_p10 = scmp.ne.s32.totalorder %s270_s15, %s1333_s13  ;;  %p2461_p1 = pmov %p2460_p11 }
  0xa2   : > { %p1338_p8 = scmp.lt.u32.totalorder %s270_s15, %s2420_s5  ;;  %p1339_p9 = scmp.lt.u32.totalorder %s1961_s1, %s1333_s13 }
  0xa3   : > { %p1335_p7 = pnand %p1334_p10, %p2461_p1  ;;  %p1341_p2 = scmp.lt.u32.totalorder %s1333_s13, %s270_s15 }
  0xa4   : > { %p1340_p12 = por %p1339_p9, %p1338_p8 }
  0xa5   : > { %p1336_p3 = pneg %p1335_p7 }
  0xa6   : > { %p1342_p4 = por %p1341_p2, %p1340_p12 }
  0xa8   : > { %p1343_p13 = pnand %p1342_p4, %p1336_p3 }
  0xaa   : > { %1346 = shalt.err (!%p1343_p13)  }
  0xab   : > { %s1347_s2 = scalar_lea.vmem %s2026_s16, 16  ;;  %p2462_p5 = pmov %p2461_p1 }
  0xac   : > { %p1348_p6 = scmp.ne.s32.totalorder %s2026_s16, %s1347_s2  ;;  %p1354_p10 = scmp.lt.s32.totalorder %s2026_s16, %s1945_s30 }
  0xad   : > { %p1355_p1 = scmp.lt.s32.totalorder %s1972_s22, %s1347_s2 }
  0xae   : > { %p1349_p0 = pnand %p1348_p6, %p2462_p5 }
  0xaf   : > { %p1356_p7 = por %p1355_p1, %p1354_p10 }
  0xb0   : > { %p1350_p11 = pneg %p1349_p0 }
  0xb2   : > { %p1357_p8 = pnand %p1356_p7, %p1350_p11 }
  0xb4   : > { %1360 = shalt.err (!%p1357_p8)  }
  0xb5   : > { %p2463_p9 = pmov %p2462_p5  ;;  %s992_s3 = sshll.u32 %s2024_s21, 4 }
  0xb6   : > { %s286_s19 = scalar_lea.hbm %s2420_s5, %s992_s3  ;;  %s2058_s14 = sld [smem:[#allocation5 + $0x6]] }
  0xb7   : > { %1106 = dma.hbm_to_vmem [thread:$0]  (%p2463_p9), %s270_s15, 16, %s2026_s16, [#allocation3 + $0x3] }
  0xb8   : > { %s1361_s23 = scalar_lea.hbm %s286_s19, 16  ;;  %p2464_p12 = pmov %p2462_p5 }
  0xb9   : > { %p1362_p3 = scmp.ne.s32.totalorder %s286_s19, %s1361_s23  ;;  %p1366_p13 = scmp.lt.u32.totalorder %s286_s19, %s2420_s5 }
  0xba   : > { %p1367_p6 = scmp.lt.u32.totalorder %s1961_s1, %s1361_s23  ;;  %p1369_p0 = scmp.lt.u32.totalorder %s1361_s23, %s286_s19 }
  0xbb   : > { %p1363_p2 = pnand %p1362_p3, %p2464_p12 }
  0xbc   : > { %p1368_p5 = por %p1367_p6, %p1366_p13 }
  0xbd   : > { %p1364_p4 = pneg %p1363_p2 }
  0xbe   : > { %p1370_p11 = por %p1369_p0, %p1368_p5 }
  0xc0   : > { %p1371_p10 = pnand %p1370_p11, %p1364_p4 }
  0xc2   : > { %1374 = shalt.err (!%p1371_p10)  }
  0xc3   : > { %s1375_s21 = scalar_lea.vmem %s2028_s9, 16  ;;  %p2465_p7 = pmov %p2463_p9 }
  0xc4   : > { %p1376_p1 = scmp.ne.s32.totalorder %s2028_s9, %s1375_s21  ;;  %p1382_p3 = scmp.lt.s32.totalorder %s2028_s9, %s1945_s30 }
  0xc5   : > { %p1383_p12 = scmp.lt.s32.totalorder %s1972_s22, %s1375_s21 }
  0xc6   : > { %p1377_p8 = pnand %p1376_p1, %p2465_p7 }
  0xc7   : > { %p1384_p2 = por %p1383_p12, %p1382_p3 }
  0xc8   : > { %p1378_p9 = pneg %p1377_p8 }
  0xca   : > { %p1385_p6 = pnand %p1384_p2, %p1378_p9 }
  0xcc   : > { %1388 = shalt.err (!%p1385_p6)  }
  0xcd   : > { %p2466_p13 = pmov %p2465_p7  ;;  %s994_s16 = sshll.u32 %s2030_s18, 4 }
  0xce   : > { %s302_s3 = scalar_lea.hbm %s2420_s5, %s994_s16  ;;  %s1800_s17 = smov [#allocation2 + $0x6]  }
  0xcf   : > { %1107 = dma.hbm_to_vmem [thread:$0]  (%p2466_p13), %s286_s19, 16, %s2028_s9, [#allocation3 + $0x4] }
  0xd0   : > { %s328_s8 = sshll.u32 %s1800_s17, 4  ;;  %s1389_s23 = scalar_lea.hbm %s302_s3, 16  ;;  %s329_s8 = int_to_ptr.vmem [resolvable:$true] %s328_s8 }
  0xd1   : > { %p1390_p4 = scmp.ne.s32.totalorder %s302_s3, %s1389_s23  ;;  %p2467_p5 = pmov %p2465_p7 }
  0xd2   : > { %p1394_p10 = scmp.lt.u32.totalorder %s302_s3, %s2420_s5  ;;  %p1395_p1 = scmp.lt.u32.totalorder %s1961_s1, %s1389_s23 }
  0xd3   : > { %p1391_p0 = pnand %p1390_p4, %p2467_p5  ;;  %p1397_p8 = scmp.lt.u32.totalorder %s1389_s23, %s302_s3 }
  0xd4   : > { %p1396_p7 = por %p1395_p1, %p1394_p10 }
  0xd5   : > { %p1392_p11 = pneg %p1391_p0 }
  0xd6   : > { %p1398_p9 = por %p1397_p8, %p1396_p7 }
  0xd8   : > { %p1399_p3 = pnand %p1398_p9, %p1392_p11 }
  0xda   : > { %1402 = shalt.err (!%p1399_p3)  }
  0xdb   : > { %s1403_s9 = scalar_lea.vmem %s2053_s20, 16  ;;  %p2468_p2 = pmov %p2467_p5 }
  0xdc   : > { %p1404_p12 = scmp.ne.s32.totalorder %s2053_s20, %s1403_s9  ;;  %p1410_p4 = scmp.lt.s32.totalorder %s2053_s20, %s1945_s30 }
  0xdd   : > { %p1411_p5 = scmp.lt.s32.totalorder %s1972_s22, %s1403_s9 }
  0xde   : > { %p1405_p6 = pnand %p1404_p12, %p2468_p2 }
  0xdf   : > { %p1412_p0 = por %p1411_p5, %p1410_p4 }
  0xe0   : > { %p1406_p13 = pneg %p1405_p6 }
  0xe2   : > { %p1413_p1 = pnand %p1412_p0, %p1406_p13 }
  0xe4   : > { %1416 = shalt.err (!%p1413_p1)  }
  0xe5   : > { %p2469_p10 = pmov %p2468_p2  ;;  %s2096_s18 = sld [smem:[#allocation5 + $0x7]] }
  0xe6   : > { %s996_s19 = sshll.u32 %s2058_s14, 4  ;;  %s1801_s2 = smov [#allocation2 + $0x7]  }
  0xe7   : > { %1108 = dma.hbm_to_vmem [thread:$0]  (%p2469_p10), %s302_s3, 16, %s2053_s20, [#allocation3 + $0x5] }
  0xe8   : > { %s318_s15 = scalar_lea.hbm %s2420_s5, %s996_s19  ;;  %s344_s17 = sshll.u32 %s1801_s2, 4  ;;  %s345_s17 = int_to_ptr.vmem [resolvable:$true] %s344_s17 }
  0xe9   : > { %s1417_s23 = scalar_lea.hbm %s318_s15, 16  ;;  %p2470_p7 = pmov %p2468_p2 }
  0xea   : > { %p1418_p11 = scmp.ne.s32.totalorder %s318_s15, %s1417_s23  ;;  %p1422_p3 = scmp.lt.u32.totalorder %s318_s15, %s2420_s5 }
  0xeb   : > { %p1423_p12 = scmp.lt.u32.totalorder %s1961_s1, %s1417_s23  ;;  %p1425_p6 = scmp.lt.u32.totalorder %s1417_s23, %s318_s15 }
  0xec   : > { %p1419_p8 = pnand %p1418_p11, %p2470_p7 }
  0xed   : > { %p1424_p2 = por %p1423_p12, %p1422_p3 }
  0xee   : > { %p1420_p9 = pneg %p1419_p8 }
  0xef   : > { %p1426_p13 = por %p1425_p6, %p1424_p2 }
  0xf1   : > { %p1427_p4 = pnand %p1426_p13, %p1420_p9 }
  0xf3   : > { %1430 = shalt.err (!%p1427_p4)  }
  0xf4   : > { %s1431_s20 = scalar_lea.vmem %s329_s8, 16  ;;  %p2471_p0 = pmov %p2470_p7 }
  0xf5   : > { %p1432_p5 = scmp.ne.s32.totalorder %s329_s8, %s1431_s20  ;;  %p1438_p11 = scmp.lt.s32.totalorder %s329_s8, %s1945_s30 }
  0xf6   : > { %p1439_p7 = scmp.lt.s32.totalorder %s1972_s22, %s1431_s20 }
  0xf7   : > { %p1433_p1 = pnand %p1432_p5, %p2471_p0 }
  0xf8   : > { %p1440_p8 = por %p1439_p7, %p1438_p11 }
  0xf9   : > { %p1434_p10 = pneg %p1433_p1 }
  0xfb   : > { %p1441_p3 = pnand %p1440_p8, %p1434_p10 }
  0xfd   : > { %1444 = shalt.err (!%p1441_p3)  }
  0xfe   : > { %p2472_p12 = pmov %p2471_p0  ;;  %s216_s14 = sand.u32 1, %s1862_s29 }
  0xff   : > { %s2117_s3 = ssub.s32 1, %s216_s14  ;;  %s456_s9 = sadd.s32 1, %s1862_s29 }
 0x100   : > { %1109 = dma.hbm_to_vmem [thread:$0]  (%p2472_p12), %s318_s15, 16, %s329_s8, [#allocation3 + $0x6] }
 0x101   : > { %s998_s19 = sshll.u32 %s2096_s18, 4  ;;  %p2124_p9 = scmp.lt.s32.totalorder %s456_s9, 2 }
 0x102   : > { %s334_s2 = scalar_lea.hbm %s2420_s5, %s998_s19  ;;  %p2474_p6 = pmov %p2471_p0 }
 0x103   : > { %s2473_s23 = scalar_select %p2124_p9, 1, 0 }
 0x104   : > { %s1445_s13 = scalar_lea.hbm %s334_s2, 16  ;;  %p1450_p5 = scmp.lt.u32.totalorder %s334_s2, %s2420_s5 }
 0x105   : > { %p1446_p2 = scmp.ne.s32.totalorder %s334_s2, %s1445_s13  ;;  %p1451_p0 = scmp.lt.u32.totalorder %s1961_s1, %s1445_s13 }
 0x106   : > { %p1453_p10 = scmp.lt.u32.totalorder %s1445_s13, %s334_s2 }
 0x107   : > { %p1447_p13 = pnand %p1446_p2, %p2474_p6  ;;  %p1452_p1 = por %p1451_p0, %p1450_p5 }
 0x109   : > { %p1448_p4 = pneg %p1447_p13  ;;  %p1454_p11 = por %p1453_p10, %p1452_p1 }
 0x10b   : > { %p1455_p7 = pnand %p1454_p11, %p1448_p4 }
 0x10d   : > { %1458 = shalt.err (!%p1455_p7)  }
 0x10e   : > { %s1459_s18 = scalar_lea.vmem %s345_s17, 16  ;;  %p2475_p3 = pmov %p2474_p6 }
 0x10f   : > { %p1460_p8 = scmp.ne.s32.totalorder %s345_s17, %s1459_s18  ;;  %p1466_p2 = scmp.lt.s32.totalorder %s345_s17, %s1945_s30 }
 0x110   : > { %p1467_p6 = scmp.lt.s32.totalorder %s1972_s22, %s1459_s18 }
 0x111   : > { %p1461_p12 = pnand %p1460_p8, %p2475_p3 }
 0x112   : > { %p1468_p13 = por %p1467_p6, %p1466_p2 }
 0x113   : > { %p1462_p9 = pneg %p1461_p12 }
 0x115   : > { %p1469_p0 = pnand %p1468_p13, %p1462_p9 }
 0x117   : > { %1472 = shalt.err (!%p1469_p0)  }
 0x118   : > { %p2476_p5 = pmov %p2475_p3  ;;  %s1056_s25 = sshll.u32 %s1862_s29, 3 }
 0x119   : > { %s1003_s20 = sshll.u32 %s2117_s3, 3  ;;  %s2142_s9 = sadd.s32 8, %s1056_s25 }
 0x11a   : > { %1110 = dma.hbm_to_vmem [thread:$0]  (%p2476_p5), %s334_s2, 16, %s345_s17, [#allocation3 + $0x7] }
 0x11b   : > { %p2477_p4 = scmp.ne.s32.totalorder %s2473_s23, 0  ;;  %s2149_s13 = scalar_lea.vmem [#allocation2], %s1003_s20 }
 0x11c   : > { %s475_s8 = sshll.u32 %s2149_s13, 4  ;;  %s2154_s15 = sshll.u32 %s216_s14, 3  ;;  %s476_s8 = int_to_ptr.vmem [resolvable:$true] %s475_s8 }
 0x11d   : > { %s1112_s19 = scalar_select %p2477_p4, [#allocation5], [#allocation44] }
 0x11e   : > { %s1113_s21 = scalar_select %p2477_p4, %s2142_s9, 0 }
 0x11f   : > { %s479_s17 = sadd.s32 1, %s2142_s9  ;;  %s860_s3 = scalar_lea.vmem %s2149_s13, 1 [#allocation2] }
 0x120   : > { %s462_s16 = sld [smem:[%s1112_s19 + %s1113_s21]]  ;;  %s2489_s17 = smov (!%p2477_p4, %s479_s17), 0 }
 0x121   : > { %s1115_s2 = scalar_select %p2477_p4, [#allocation5], [#allocation45] }
 0x122   : > { %s494_s18 = sshll.u32 %s860_s3, 4  ;;  %s2167_s0 = scalar_lea.sflag [#allocation3], %s1003_s20  ;;  %s2183_s18 = int_to_ptr.vmem [resolvable:$true] %s494_s18 }
 0x123   : > { %s2162_s19 = sld [smem:[%s1115_s2 + %s2489_s17]]  ;;  %s863_s14 = scalar_lea.sflag %s2167_s0, 1 [#allocation3] }
 0x126   : > { %s1004_s25 = sshll.u32 %s462_s16, 4 }
 0x127   : > { %s465_s10 = scalar_lea.hbm %s2420_s5, %s1004_s25 }
 0x128   : > { %s1473_s7 = scalar_lea.hbm %s465_s10, 16  ;;  %p1478_p11 = scmp.lt.u32.totalorder %s465_s10, %s2420_s5 }
 0x129   : > { %p1474_p9 = scmp.ne.s32.totalorder %s465_s10, %s1473_s7  ;;  %p1479_p7 = scmp.lt.u32.totalorder %s1961_s1, %s1473_s7 }
 0x12a   : > { %p1481_p3 = scmp.lt.u32.totalorder %s1473_s7, %s465_s10 }
 0x12b   : > { %p1475_p1 = pnand %p1474_p9, %p2477_p4  ;;  %p1480_p8 = por %p1479_p7, %p1478_p11 }
 0x12d   : > { %p1476_p10 = pneg %p1475_p1  ;;  %p1482_p12 = por %p1481_p3, %p1480_p8 }
 0x12f   : > { %p1483_p2 = pnand %p1482_p12, %p1476_p10 }
 0x131   : > { %1486 = shalt.err (!%p1483_p2)  }
 0x132   : > { %s1487_s4 = scalar_lea.vmem %s476_s8, 16  ;;  %p1494_p5 = scmp.lt.s32.totalorder %s476_s8, %s1945_s30 }
 0x133   : > { %p1488_p6 = scmp.ne.s32.totalorder %s476_s8, %s1487_s4  ;;  %p1495_p9 = scmp.lt.s32.totalorder %s1972_s22, %s1487_s4 }
 0x135   : > { %p1489_p13 = pnand %p1488_p6, %p2477_p4  ;;  %p1496_p1 = por %p1495_p9, %p1494_p5 }
 0x137   : > { %p1490_p0 = pneg %p1489_p13 }
 0x139   : > { %p1497_p7 = pnand %p1496_p1, %p1490_p0 }
 0x13b   : > { %1500 = shalt.err (!%p1497_p7)  }
 0x13c   : > { %1114 = dma.hbm_to_vmem [thread:$0]  (%p2477_p4), %s465_s10, 16, %s476_s8, %s2167_s0 }
 0x13d   : > { %s498_s26 = sadd.s32 2, %s2142_s9  ;;  %s1005_s12 = sshll.u32 %s2162_s19, 4 }
 0x13e   : > { %s1118_s7 = scalar_select %p2477_p4, [#allocation5], [#allocation46] }
 0x13f   : > { %s2491_s26 = smov (!%p2477_p4, %s498_s26), 0  ;;  %s868_s20 = scalar_lea.vmem %s2149_s13, 2 [#allocation2] }
 0x140   : > { %s483_s3 = scalar_lea.hbm %s2420_s5, %s1005_s12  ;;  %s2195_s2 = sld [smem:[%s1118_s7 + %s2491_s26]] }
 0x141   : > { %s1501_s25 = scalar_lea.hbm %s483_s3, 16  ;;  %p1506_p3 = scmp.lt.u32.totalorder %s483_s3, %s2420_s5 }
 0x142   : > { %p1502_p10 = scmp.ne.s32.totalorder %s483_s3, %s1501_s25  ;;  %p1507_p12 = scmp.lt.u32.totalorder %s1961_s1, %s1501_s25 }
 0x143   : > { %p1509_p6 = scmp.lt.u32.totalorder %s1501_s25, %s483_s3 }
 0x144   : > { %p1503_p11 = pnand %p1502_p10, %p2477_p4  ;;  %p1508_p2 = por %p1507_p12, %p1506_p3 }
 0x146   : > { %p1504_p8 = pneg %p1503_p11  ;;  %p1510_p13 = por %p1509_p6, %p1508_p2 }
 0x148   : > { %p1511_p0 = pnand %p1510_p13, %p1504_p8 }
 0x14a   : > { %1514 = shalt.err (!%p1511_p0)  }
 0x14b   : > { %s1515_s19 = scalar_lea.vmem %s2183_s18, 16  ;;  %p1522_p7 = scmp.lt.s32.totalorder %s2183_s18, %s1945_s30 }
 0x14c   : > { %p1516_p5 = scmp.ne.s32.totalorder %s2183_s18, %s1515_s19  ;;  %p1523_p10 = scmp.lt.s32.totalorder %s1972_s22, %s1515_s19 }
 0x14e   : > { %p1517_p9 = pnand %p1516_p5, %p2477_p4  ;;  %p1524_p11 = por %p1523_p10, %p1522_p7 }
 0x150   : > { %p1518_p1 = pneg %p1517_p9 }
 0x152   : > { %p1525_p3 = pnand %p1524_p11, %p1518_p1 }
 0x154   : > { %1528 = shalt.err (!%p1525_p3)  }
 0x155   : > { %1117 = dma.hbm_to_vmem [thread:$0]  (%p2477_p4), %s483_s3, 16, %s2183_s18, %s863_s14 }
 0x156   : > { %s513_s21 = sshll.u32 %s868_s20, 4  ;;  %s517_s4 = sadd.s32 3, %s2142_s9  ;;  %s514_s21 = int_to_ptr.vmem [resolvable:$true] %s513_s21 }
 0x157   : > { %s871_s26 = scalar_lea.sflag %s2167_s0, 2 [#allocation3]  ;;  %s2493_s4 = smov (!%p2477_p4, %s517_s4), 0 }
 0x158   : > { %s1121_s7 = scalar_select %p2477_p4, [#allocation5], [#allocation47] }
 0x159   : > { %s1008_s12 = sshll.u32 %s2195_s2, 4  ;;  %s876_s16 = scalar_lea.vmem %s2149_s13, 3 [#allocation2] }
 0x15a   : > { %s502_s10 = scalar_lea.hbm %s2420_s5, %s1008_s12  ;;  %s2226_s8 = sld [smem:[%s1121_s7 + %s2493_s4]] }
 0x15b   : > { %s1529_s19 = scalar_lea.hbm %s502_s10, 16  ;;  %p1534_p6 = scmp.lt.u32.totalorder %s502_s10, %s2420_s5 }
 0x15c   : > { %p1530_p8 = scmp.ne.s32.totalorder %s502_s10, %s1529_s19  ;;  %p1535_p13 = scmp.lt.u32.totalorder %s1961_s1, %s1529_s19 }
 0x15d   : > { %p1537_p5 = scmp.lt.u32.totalorder %s1529_s19, %s502_s10 }
 0x15e   : > { %p1531_p12 = pnand %p1530_p8, %p2477_p4  ;;  %p1536_p0 = por %p1535_p13, %p1534_p6 }
 0x160   : > { %p1532_p2 = pneg %p1531_p12  ;;  %p1538_p9 = por %p1537_p5, %p1536_p0 }
 0x162   : > { %p1539_p1 = pnand %p1538_p9, %p1532_p2 }
 0x164   : > { %1542 = shalt.err (!%p1539_p1)  }
 0x165   : > { %s1543_s20 = scalar_lea.vmem %s514_s21, 16  ;;  %p1550_p3 = scmp.lt.s32.totalorder %s514_s21, %s1945_s30 }
 0x166   : > { %p1544_p7 = scmp.ne.s32.totalorder %s514_s21, %s1543_s20  ;;  %p1551_p8 = scmp.lt.s32.totalorder %s1972_s22, %s1543_s20 }
 0x168   : > { %p1545_p10 = pnand %p1544_p7, %p2477_p4  ;;  %p1552_p12 = por %p1551_p8, %p1550_p3 }
 0x16a   : > { %p1546_p11 = pneg %p1545_p10 }
 0x16c   : > { %p1553_p6 = pnand %p1552_p12, %p1546_p11 }
 0x16e   : > { %1556 = shalt.err (!%p1553_p6)  }
 0x16f   : > { %1120 = dma.hbm_to_vmem [thread:$0]  (%p2477_p4), %s502_s10, 16, %s514_s21, %s871_s26 }
 0x170   : > { %s532_s3 = sshll.u32 %s876_s16, 4  ;;  %s536_s2 = sadd.s32 4, %s2142_s9  ;;  %s533_s3 = int_to_ptr.vmem [resolvable:$true] %s532_s3 }
 0x171   : > { %s879_s4 = scalar_lea.sflag %s2167_s0, 3 [#allocation3]  ;;  %s2495_s2 = smov (!%p2477_p4, %s536_s2), 0 }
 0x172   : > { %s1124_s7 = scalar_select %p2477_p4, [#allocation5], [#allocation48] }
 0x173   : > { %s1011_s12 = sshll.u32 %s2226_s8, 4  ;;  %s884_s17 = scalar_lea.vmem %s2149_s13, 4 [#allocation2] }
 0x174   : > { %s521_s18 = scalar_lea.hbm %s2420_s5, %s1011_s12  ;;  %s2253_s14 = sld [smem:[%s1124_s7 + %s2495_s2]] }
 0x175   : > { %s1557_s20 = scalar_lea.hbm %s521_s18, 16  ;;  %p1562_p5 = scmp.lt.u32.totalorder %s521_s18, %s2420_s5 }
 0x176   : > { %p1558_p2 = scmp.ne.s32.totalorder %s521_s18, %s1557_s20  ;;  %p1563_p9 = scmp.lt.u32.totalorder %s1961_s1, %s1557_s20 }
 0x177   : > { %p1565_p7 = scmp.lt.u32.totalorder %s1557_s20, %s521_s18 }
 0x178   : > { %p1559_p13 = pnand %p1558_p2, %p2477_p4  ;;  %p1564_p1 = por %p1563_p9, %p1562_p5 }
 0x17a   : > { %p1560_p0 = pneg %p1559_p13  ;;  %p1566_p10 = por %p1565_p7, %p1564_p1 }
 0x17c   : > { %p1567_p11 = pnand %p1566_p10, %p1560_p0 }
 0x17e   : > { %1570 = shalt.err (!%p1567_p11)  }
 0x17f   : > { %s1571_s16 = scalar_lea.vmem %s533_s3, 16  ;;  %p1578_p6 = scmp.lt.s32.totalorder %s533_s3, %s1945_s30 }
 0x180   : > { %p1572_p3 = scmp.ne.s32.totalorder %s533_s3, %s1571_s16  ;;  %p1579_p2 = scmp.lt.s32.totalorder %s1972_s22, %s1571_s16 }
 0x182   : > { %p1573_p8 = pnand %p1572_p3, %p2477_p4  ;;  %p1580_p13 = por %p1579_p2, %p1578_p6 }
 0x184   : > { %p1574_p12 = pneg %p1573_p8 }
 0x186   : > { %p1581_p5 = pnand %p1580_p13, %p1574_p12 }
 0x188   : > { %1584 = shalt.err (!%p1581_p5)  }
 0x189   : > { %1123 = dma.hbm_to_vmem [thread:$0]  (%p2477_p4), %s521_s18, 16, %s533_s3, %s879_s4 }
 0x18a   : > { %s551_s10 = sshll.u32 %s884_s17, 4  ;;  %s555_s8 = sadd.s32 5, %s2142_s9  ;;  %s552_s10 = int_to_ptr.vmem [resolvable:$true] %s551_s10 }
 0x18b   : > { %s887_s2 = scalar_lea.sflag %s2167_s0, 4 [#allocation3]  ;;  %s2497_s8 = smov (!%p2477_p4, %s555_s8), 0 }
 0x18c   : > { %s1127_s7 = scalar_select %p2477_p4, [#allocation5], [#allocation49] }
 0x18d   : > { %s1014_s12 = sshll.u32 %s2253_s14, 4  ;;  %s892_s25 = scalar_lea.vmem %s2149_s13, 5 [#allocation2] }
 0x18e   : > { %s540_s21 = scalar_lea.hbm %s2420_s5, %s1014_s12  ;;  %s556_s26 = sld [smem:[%s1127_s7 + %s2497_s8]] }
 0x18f   : > { %s1585_s16 = scalar_lea.hbm %s540_s21, 16  ;;  %p1590_p7 = scmp.lt.u32.totalorder %s540_s21, %s2420_s5 }
 0x190   : > { %p1586_p0 = scmp.ne.s32.totalorder %s540_s21, %s1585_s16  ;;  %p1591_p10 = scmp.lt.u32.totalorder %s1961_s1, %s1585_s16 }
 0x191   : > { %p1593_p3 = scmp.lt.u32.totalorder %s1585_s16, %s540_s21 }
 0x192   : > { %p1587_p9 = pnand %p1586_p0, %p2477_p4  ;;  %p1592_p11 = por %p1591_p10, %p1590_p7 }
 0x194   : > { %p1588_p1 = pneg %p1587_p9  ;;  %p1594_p8 = por %p1593_p3, %p1592_p11 }
 0x196   : > { %p1595_p12 = pnand %p1594_p8, %p1588_p1 }
 0x198   : > { %1598 = shalt.err (!%p1595_p12)  }
 0x199   : > { %s1599_s17 = scalar_lea.vmem %s552_s10, 16  ;;  %p1606_p5 = scmp.lt.s32.totalorder %s552_s10, %s1945_s30 }
 0x19a   : > { %p1600_p6 = scmp.ne.s32.totalorder %s552_s10, %s1599_s17  ;;  %p1607_p0 = scmp.lt.s32.totalorder %s1972_s22, %s1599_s17 }
 0x19c   : > { %p1601_p2 = pnand %p1600_p6, %p2477_p4  ;;  %p1608_p9 = por %p1607_p0, %p1606_p5 }
 0x19e   : > { %p1602_p13 = pneg %p1601_p2 }
 0x1a0   : > { %p1609_p7 = pnand %p1608_p9, %p1602_p13 }
 0x1a2   : > { %1612 = shalt.err (!%p1609_p7)  }
 0x1a3   : > { %1126 = dma.hbm_to_vmem [thread:$0]  (%p2477_p4), %s540_s21, 16, %s552_s10, %s887_s2 }
 0x1a4   : > { %s570_s18 = sshll.u32 %s892_s25, 4  ;;  %s895_s14 = scalar_lea.sflag %s2167_s0, 5 [#allocation3]  ;;  %s571_s18 = int_to_ptr.vmem [resolvable:$true] %s570_s18 }
 0x1a5   : > { %s1017_s8 = sshll.u32 %s556_s26, 4 }
 0x1a6   : > { %s559_s19 = scalar_lea.hbm %s2420_s5, %s1017_s8 }
 0x1a7   : > { %s1613_s20 = scalar_lea.hbm %s559_s19, 16  ;;  %p1618_p3 = scmp.lt.u32.totalorder %s559_s19, %s2420_s5 }
 0x1a8   : > { %p1614_p1 = scmp.ne.s32.totalorder %s559_s19, %s1613_s20  ;;  %p1619_p8 = scmp.lt.u32.totalorder %s1961_s1, %s1613_s20 }
 0x1a9   : > { %p1621_p6 = scmp.lt.u32.totalorder %s1613_s20, %s559_s19 }
 0x1aa   : > { %p1615_p10 = pnand %p1614_p1, %p2477_p4  ;;  %p1620_p12 = por %p1619_p8, %p1618_p3 }
 0x1ac   : > { %p1616_p11 = pneg %p1615_p10  ;;  %p1622_p2 = por %p1621_p6, %p1620_p12 }
 0x1ae   : > { %p1623_p13 = pnand %p1622_p2, %p1616_p11 }
 0x1b0   : > { %1626 = shalt.err (!%p1623_p13)  }
 0x1b1   : > { %s1627_s10 = scalar_lea.vmem %s571_s18, 16  ;;  %p1634_p7 = scmp.lt.s32.totalorder %s571_s18, %s1945_s30 }
 0x1b2   : > { %p1628_p5 = scmp.ne.s32.totalorder %s571_s18, %s1627_s10  ;;  %p1635_p1 = scmp.lt.s32.totalorder %s1972_s22, %s1627_s10 }
 0x1b4   : > { %p1629_p0 = pnand %p1628_p5, %p2477_p4  ;;  %p1636_p10 = por %p1635_p1, %p1634_p7 }
 0x1b6   : > { %p1630_p9 = pneg %p1629_p0 }
 0x1b8   : > { %p1637_p3 = pnand %p1636_p10, %p1630_p9 }
 0x1ba   : > { %1640 = shalt.err (!%p1637_p3)  }
 0x1bb   : > { %1129 = dma.hbm_to_vmem [thread:$0]  (%p2477_p4), %s559_s19, 16, %s571_s18, %s895_s14  ;;  %v348_v21 = vlaneseq  ;;  %v353_v22 = vpop.permute.xlu0 %352  ;;  %v362_v23 = vpop.permute.xlu1 %361  ;;  %vm380_vm7 = vcmask 523264  }
 0x1bc   : > { %s574_s2 = sadd.s32 6, %s2142_s9  ;;  %s593_s21 = sadd.s32 7, %s2142_s9 }
 0x1bd   : > { %v349_v24 = vand.u32 127, %v348_v21  ;;  %s1130_s25 = scalar_select %p2477_p4, [#allocation5], [#allocation50] }
 0x1be   : > { %s2499_s2 = smov (!%p2477_p4, %s574_s2), 0  ;;  %s2501_s21 = smov (!%p2477_p4, %s593_s21), 0 }
 0x1bf   : > { %v357_v25 = vpop.permute.xlu0 %356  ;;  %v367_v26 = vpop.permute.xlu1 %366  ;;  %vm354_vm1 = vcmp.eq.s32.totalorder %v349_v24, %v353_v22  ;;  %vm363_vm4 = vcmp.eq.s32.totalorder %v349_v24, %v362_v23  ;;  %s575_s26 = sld [smem:[%s1130_s25 + %s2499_s2]]  ;;  %s900_s17 = scalar_lea.vmem %s2149_s13, 6 [#allocation2] }
 0x1c0   : > { %vm358_vm2 = vcmp.eq.s32.totalorder %v349_v24, %v357_v25  ;;  %vm368_vm3 = vcmp.eq.s32.totalorder %v349_v24, %v367_v26  ;;  %s1133_s4 = scalar_select %p2477_p4, [#allocation5], [#allocation51] }
 0x1c1   : > { %vm359_vm5 = vmor %vm354_vm1, %vm358_vm2  ;;  %s589_s14 = sshll.u32 %s900_s17, 4  ;;  %s908_s8 = scalar_lea.vmem %s2149_s13, 7 [#allocation2]  ;;  %s590_s14 = int_to_ptr.vmem [resolvable:$true] %s589_s14 }
 0x1c2   : > { %vm364_vm6 = vmor %vm359_vm5, %vm363_vm4  ;;  %s2322_s18 = sld [smem:[%s1133_s4 + %s2501_s21]]  ;;  %s903_s12 = scalar_lea.sflag %s2167_s0, 6 [#allocation3] }
 0x1c3   : > { %vm369_vm8 = vmor %vm364_vm6, %vm368_vm3 }
 0x1c4   : > { %v999_v27 = vsel %vm369_vm8, 1.0, %v1793_v19 }
 0x1c5   : > { %1084 = vmatmul.mubr.msk.f32.vlgmr.msra.gmra.mrb[0].mxu0 %vm380_vm7, %v999_v27  ;;  %s1020_s7 = sshll.u32 %s575_s26, 4 }
 0x1c6   : > { %s578_s16 = scalar_lea.hbm %s2420_s5, %s1020_s7 }
 0x1c7   : > { %s1641_s3 = scalar_lea.hbm %s578_s16, 16  ;;  %p1646_p6 = scmp.lt.u32.totalorder %s578_s16, %s2420_s5 }
 0x1c8   : > { %p1642_p11 = scmp.ne.s32.totalorder %s578_s16, %s1641_s3  ;;  %p1647_p2 = scmp.lt.u32.totalorder %s1961_s1, %s1641_s3 }
 0x1c9   : > { %p1649_p5 = scmp.lt.u32.totalorder %s1641_s3, %s578_s16 }
 0x1ca   : > { %p1643_p8 = pnand %p1642_p11, %p2477_p4  ;;  %p1648_p13 = por %p1647_p2, %p1646_p6 }
 0x1cc   : > { %p1644_p12 = pneg %p1643_p8  ;;  %p1650_p0 = por %p1649_p5, %p1648_p13 }
 0x1ce   : > { %p1651_p9 = pnand %p1650_p0, %p1644_p12 }
 0x1d0   : > { %1654 = shalt.err (!%p1651_p9)  }
 0x1d1   : > { %s1655_s13 = scalar_lea.vmem %s590_s14, 16  ;;  %p1662_p3 = scmp.lt.s32.totalorder %s590_s14, %s1945_s30 }
 0x1d2   : > { %p1656_p7 = scmp.ne.s32.totalorder %s590_s14, %s1655_s13  ;;  %p1663_p11 = scmp.lt.s32.totalorder %s1972_s22, %s1655_s13 }
 0x1d4   : > { %p1657_p1 = pnand %p1656_p7, %p2477_p4  ;;  %p1664_p8 = por %p1663_p11, %p1662_p3 }
 0x1d6   : > { %p1658_p10 = pneg %p1657_p1 }
 0x1d8   : > { %p1665_p2 = pnand %p1664_p8, %p1658_p10 }
 0x1da   : > { %1668 = shalt.err (!%p1665_p2)  }
 0x1db   : > { %1132 = dma.hbm_to_vmem [thread:$0]  (%p2477_p4), %s578_s16, 16, %s590_s14, %s903_s12 }
 0x1dc   : > { %s911_s2 = scalar_lea.sflag %s2167_s0, 7 [#allocation3]  ;;  %s608_s25 = sshll.u32 %s908_s8, 4  ;;  %s609_s25 = int_to_ptr.vmem [resolvable:$true] %s608_s25 }
 0x1dd   : > { %s1023_s21 = sshll.u32 %s2322_s18, 4 }
 0x1de   : > { %s597_s17 = scalar_lea.hbm %s2420_s5, %s1023_s21 }
 0x1df   : > { %s1669_s7 = scalar_lea.hbm %s597_s17, 16  ;;  %p1674_p5 = scmp.lt.u32.totalorder %s597_s17, %s2420_s5 }
 0x1e0   : > { %p1670_p12 = scmp.ne.s32.totalorder %s597_s17, %s1669_s7  ;;  %p1675_p0 = scmp.lt.u32.totalorder %s1961_s1, %s1669_s7 }
 0x1e1   : > { %p1677_p7 = scmp.lt.u32.totalorder %s1669_s7, %s597_s17 }
 0x1e2   : > { %p1671_p6 = pnand %p1670_p12, %p2477_p4  ;;  %p1676_p9 = por %p1675_p0, %p1674_p5 }
 0x1e4   : > { %p1672_p13 = pneg %p1671_p6  ;;  %p1678_p1 = por %p1677_p7, %p1676_p9 }
 0x1e6   : > { %p1679_p10 = pnand %p1678_p1, %p1672_p13 }
 0x1e8   : > { %1682 = shalt.err (!%p1679_p10)  }
 0x1e9   : > { %s1683_s0 = scalar_lea.vmem %s609_s25, 16  ;;  %p1690_p2 = scmp.lt.s32.totalorder %s609_s25, %s1945_s30 }
 0x1ea   : > { %p1684_p3 = scmp.ne.s32.totalorder %s609_s25, %s1683_s0  ;;  %p1691_p12 = scmp.lt.s32.totalorder %s1972_s22, %s1683_s0 }
 0x1ec   : > { %p1685_p11 = pnand %p1684_p3, %p2477_p4  ;;  %p1692_p6 = por %p1691_p12, %p1690_p2 }
 0x1ee   : > { %p1686_p8 = pneg %p1685_p11 }
 0x1f0   : > { %p1693_p0 = pnand %p1692_p6, %p1686_p8 }
 0x1f2   : > { %1696 = shalt.err (!%p1693_p0)  }
 0x1f3   : > { %1135 = dma.hbm_to_vmem [thread:$0]  (%p2477_p4), %s597_s17, 16, %s609_s25, %s911_s2 }
 0x1f4   : > { %s211_s1 = scalar_lea.vmem [#allocation9], %s1943_s24  ;;  %s613_s18 = scalar_lea.sflag [#allocation3], %s2154_s15 }
 0x298   : > { %v450_v28 = vpop.f32.mrb[0].mxu0 }
 0x299   : > { %v1085_v29 = vpop.f32.mrb[1].mxu0 }
 0x29a   : > { %1747 = dma.done.wait %s613_s18, 16 }
 0x29b   : > { %1748 = vsyncadd %s613_s18, 4294967280  ;;  %s916_s14 = scalar_lea.sflag %s613_s18, 1 [#allocation3] }
 0x29c   : > { %1749 = dma.done.wait %s916_s14, 16 }
 0x29d   : > { %1750 = vsyncadd %s916_s14, 4294967280  ;;  %s919_s8 = scalar_lea.sflag %s613_s18, 2 [#allocation3] }
 0x29e   : > { %1751 = dma.done.wait %s919_s8, 16 }
 0x29f   : > { %1752 = vsyncadd %s919_s8, 4294967280  ;;  %s922_s30 = scalar_lea.sflag %s613_s18, 3 [#allocation3] }
 0x2a0   : > { %1753 = dma.done.wait %s922_s30, 16 }
 0x2a1   : > { %1754 = vsyncadd %s922_s30, 4294967280  ;;  %s925_s22 = scalar_lea.sflag %s613_s18, 4 [#allocation3] }
 0x2a2   : > { %1755 = dma.done.wait %s925_s22, 16 }
 0x2a3   : > { %1756 = vsyncadd %s925_s22, 4294967280  ;;  %s928_s23 = scalar_lea.sflag %s613_s18, 5 [#allocation3] }
 0x2a4   : > { %1757 = dma.done.wait %s928_s23, 16 }
 0x2a5   : > { %1758 = vsyncadd %s928_s23, 4294967280  ;;  %s931_s12 = scalar_lea.sflag %s613_s18, 6 [#allocation3] }
 0x2a6   : > { %1759 = dma.done.wait %s931_s12, 16 }
 0x2a7   : > { %1760 = vsyncadd %s931_s12, 4294967280  ;;  %s934_s16 = scalar_lea.sflag %s613_s18, 7 [#allocation3] }
 0x2a8   : > { %1761 = dma.done.wait %s934_s16, 16 }
 0x2a9   : > { %1762 = vsyncadd %s934_s16, 4294967280  ;;  %s645_s3 = scalar_lea.vmem [#allocation2], %s2154_s15  ;;  %s1037_s15 = sshll.u32 %s1862_s29, 7 }
 0x2aa   : > { %v646_v30 = vld [vmem:[%s645_s3] sm:$0xff]  ;;  %s690_s9 = sshll.u32 %s211_s1, 4  ;;  %s2369_s2 = scalar_lea.hbm %s2421_s6, %s1037_s15  ;;  %s2371_s9 = int_to_ptr.vmem [resolvable:$true] %s690_s9 }
 0x2ab   : > { %v647_v31 = vadd.f32 %v646_v30, %v450_v28  ;;  %s2478_s25 = sand.u32 1, %s1773_s27   ;;  %s1697_s21 = scalar_lea.vmem %s2371_s9, 128 }
 0x2ac   : > { %s677_s29 = scalar_lea.sflag [#allocation8], %s2478_s25  ;;  %p1698_p4 = scmp.ne.s32.totalorder %s2371_s9, %s1697_s21 }
 0x2ad   : > { %648 = vadd.xlane.f32.xlu0 %v647_v31  ;;  %v651_v32 = vmul.f32 %v647_v31, %v647_v31  ;;  %p2479_p13 = scmp.ne.s32.totalorder %s2440_s11, 0  ;;  %s1802_s26 = smov [#allocation9]  }
 0x2ae   : > { %s1701_s4 = sshll.u32 %s1802_s26, 4  ;;  %s1702_s4 = int_to_ptr.vmem [resolvable:$false] %s1701_s4 }
 0x2af   : > { %p1699_p5 = pnand %p1698_p4, %p2479_p13  ;;  %s1703_s17 = scalar_lea.vmem %s1702_s4, 256 }
 0x2b0   : > { %p1704_p7 = scmp.lt.s32.totalorder %s2371_s9, %s1702_s4  ;;  %p1705_p1 = scmp.lt.s32.totalorder %s1703_s17, %s1697_s21 }
 0x2b1   : > { %652 = vadd.xlane.f32.xlu0 %v651_v32  ;;  %p1700_p9 = pneg %p1699_p5 }
 0x2b2   : > { %p1706_p10 = por %p1705_p1, %p1704_p7 }
 0x2b4   : > { %p1707_p3 = pnand %p1706_p10, %p1700_p9 }
 0x33a   : > { %v649_v33 = vpop.xlane.xlu0 %648 }
 0x33b   : > { %v650_v34 = vmul.f32 0.03125, %v649_v33 }
 0x33d   : > { %v655_v36 = vmul.f32 %v650_v34, %v650_v34  ;;  %v657_v40 = vsub.f32 %v647_v31, %v650_v34 }
 0x33e   : > { %v653_v35 = vpop.xlane.xlu0 %652 }
 0x33f   : > { %v654_v37 = vmul.f32 0.03125, %v653_v35 }
 0x341   : > { %v656_v38 = vsub.f32 %v654_v37, %v655_v36 }
 0x343   : > { %v658_v39 = vadd.f32 1e-12, %v656_v38 }
 0x345   : > { %1207 = vrsqrt.f32 %v658_v39 }
 0x34f   : > { %v1208_v41 = vpop.eup %1207 }
 0x350   : > { %v660_v42 = vmul.f32 %v1208_v41, %v657_v40 }
 0x352   : > { %v667_v43 = vmul.f32 %v1932_v3, %v660_v42 }
 0x354   : > { %v674_v44 = vadd.f32 %v1937_v4, %v667_v43 }
 0x356   : > { %675 = vst [vmem:[%s211_s1] sm:$0xff] %v674_v44 }
 0x357   : > { %1710 = shalt.err (!%p1707_p3)
}
 0x358   : > { %s1711_s24 = scalar_lea.hbm %s2369_s2, 128  ;;  %s1715_s20 = scalar_lea.hbm %s2421_s6, 256 }
 0x359   : > { %p1712_p11 = scmp.ne.s32.totalorder %s2369_s2, %s1711_s24  ;;  %p1716_p12 = scmp.lt.u32.totalorder %s2369_s2, %s2421_s6 }
 0x35a   : > { %p1717_p6 = scmp.lt.u32.totalorder %s1715_s20, %s1711_s24  ;;  %p1719_p4 = scmp.lt.u32.totalorder %s1711_s24, %s2369_s2 }
 0x35b   : > { %p1713_p8 = pnand %p1712_p11, %p2479_p13 }
 0x35c   : > { %p1718_p0 = por %p1717_p6, %p1716_p12 }
 0x35d   : > { %p1714_p2 = pneg %p1713_p8 }
 0x35e   : > { %p1720_p5 = por %p1719_p4, %p1718_p0 }
 0x360   : > { %p1721_p9 = pnand %p1720_p5, %p1714_p2 }
 0x362   : > { %1724 = shalt.err (!%p1721_p9)
}
 0x363   : > { %1136 = dma.vmem_to_hbm [thread:$0]  (%p2479_p13), %s2371_s9, 128, %s2369_s2, %s677_s29  }
 0x364 PF: > { %s2480_s18 = sld [smem:[#allocation63_spill]]  ;;  %s2481_s14 = sld [smem:[#allocation67_spill]] }
 0x365   : > { %p1150_p7 = scmp.ge.s32.totalorder %s1781_s28, 2 }
 0x36a   : > { %s702_s8 = sand.u32 1, %s2480_s18   ;;  %p2482_p1 = scmp.ne.s32.totalorder %s2481_s14, 0 }
 0x36b   : > { %s703_s30 = scalar_lea.sflag [#allocation8], %s702_s8 }
 0x36c   : > { %p1143_p10 = pnand %p1150_p7, %p2482_p1 }
 0x36e   : > { %1764 = dma.done.wait (!%p1143_p10), %s703_s30, 128  }
 0x36f   : > { %1766 = vsyncadd (!%p1143_p10), %s703_s30, 4294967168  ;;  %s2483_s28 = sld [smem:[#allocation65_spill]]  ;;  %s2484_s22 = sld [smem:[#allocation64_spill]] }
 0x370   : > { %s2485_s0 = sld [smem:[#allocation66_spill]]  ;;  %s2486_s26 = smov %s1773_s27 }
 0x375   : > { %p23_p3 = scmp.ge.s32.totalorder %s2483_s28, 4   ;;  %s2487_s27 = smov %s2484_s22 }
 0x377   :  { %25 = sbr.rel (!%p23_p3) target bundleno = 21 (0x15), region = 218 }
 0x37e   :  { %708 = vsyncpa [#allocation7], 1 }
 0x37f   :  { %710 = vsyncpa [#allocation7 + $0x1], 1 }
 0x380   :  { %711 = vsyncpa [#allocation8], 1 }
 0x381   :  { %713 = vsyncpa [#allocation8 + $0x1], 1 }
 0x382   :  { %714 = vsyncmov [#allocation3] }
 0x385   :  { %s715_s11 = vpop.sfrf %714 }
 0x386   :  { %p1040_p13 = scmp.ne.s32.totalorder %s715_s11, 0 }
 0x388   :  { %719 = shalt.err (%p1040_p13)  }
 0x389   :  { %721 = vsyncmov [#allocation3 + $0x1] }
 0x38c   :  { %s722_s23 = vpop.sfrf %721 }
 0x38d   :  { %p1041_p11 = scmp.ne.s32.totalorder %s722_s23, 0 }
 0x38f   :  { %726 = shalt.err (%p1041_p11)  }
 0x390   :  { %728 = vsyncmov [#allocation3 + $0x2] }
 0x393   :  { %s729_s12 = vpop.sfrf %728 }
 0x394   :  { %p1042_p8 = scmp.ne.s32.totalorder %s729_s12, 0 }
 0x396   :  { %733 = shalt.err (%p1042_p8)  }
 0x397   :  { %735 = vsyncmov [#allocation3 + $0x3] }
 0x39a   :  { %s736_s16 = vpop.sfrf %735 }
 0x39b   :  { %p1043_p2 = scmp.ne.s32.totalorder %s736_s16, 0 }
 0x39d   :  { %740 = shalt.err (%p1043_p2)  }
 0x39e   :  { %742 = vsyncmov [#allocation3 + $0x4] }
 0x3a1   :  { %s743_s5 = vpop.sfrf %742 }
 0x3a2   :  { %p1044_p12 = scmp.ne.s32.totalorder %s743_s5, 0 }
 0x3a4   :  { %747 = shalt.err (%p1044_p12)  }
 0x3a5   :  { %749 = vsyncmov [#allocation3 + $0x5] }
 0x3a8   :  { %s750_s6 = vpop.sfrf %749 }
 0x3a9   :  { %p1045_p6 = scmp.ne.s32.totalorder %s750_s6, 0 }
 0x3ab   :  { %754 = shalt.err (%p1045_p6)  }
 0x3ac   :  { %756 = vsyncmov [#allocation3 + $0x6] }
 0x3af   :  { %s757_s27 = vpop.sfrf %756 }
 0x3b0   :  { %p1046_p0 = scmp.ne.s32.totalorder %s757_s27, 0 }
 0x3b2   :  { %761 = shalt.err (%p1046_p0)  }
 0x3b3   :  { %763 = vsyncmov [#allocation3 + $0x7] }
 0x3b6   :  { %s764_s28 = vpop.sfrf %763 }
 0x3b7   :  { %p1047_p4 = scmp.ne.s32.totalorder %s764_s28, 0 }
 0x3b9   :  { %768 = shalt.err (%p1047_p4)  }
 0x3ba   :  { %770 = vsyncmov [#allocation3 + $0x8] }
 0x3bd   :  { %s771_s3 = vpop.sfrf %770 }
 0x3be   :  { %p1048_p5 = scmp.ne.s32.totalorder %s771_s3, 0 }
 0x3c0   :  { %775 = shalt.err (%p1048_p5)  }
 0x3c1   :  { %777 = vsyncmov [#allocation3 + $0x9] }
 0x3c4   :  { %s778_s15 = vpop.sfrf %777 }
 0x3c5   :  { %p1049_p9 = scmp.ne.s32.totalorder %s778_s15, 0 }
 0x3c7   :  { %782 = shalt.err (%p1049_p9)  }
 0x3c8   :  { %784 = vsyncmov [#allocation3 + $0xa] }
 0x3cb   :  { %s785_s9 = vpop.sfrf %784 }
 0x3cc   :  { %p1050_p7 = scmp.ne.s32.totalorder %s785_s9, 0 }
 0x3ce   :  { %789 = shalt.err (%p1050_p7)  }
 0x3cf   :  { %791 = vsyncmov [#allocation3 + $0xb] }
 0x3d2   :  { %s792_s10 = vpop.sfrf %791 }
 0x3d3   :  { %p1051_p1 = scmp.ne.s32.totalorder %s792_s10, 0 }
 0x3d5   :  { %796 = shalt.err (%p1051_p1)  }
 0x3d6   :  { %798 = vsyncmov [#allocation3 + $0xc] }
 0x3d9   :  { %s799_s13 = vpop.sfrf %798 }
 0x3da   :  { %p1052_p10 = scmp.ne.s32.totalorder %s799_s13, 0 }
 0x3dc   :  { %803 = shalt.err (%p1052_p10)  }
 0x3dd   :  { %805 = vsyncmov [#allocation3 + $0xd] }
 0x3e0   :  { %s806_s2 = vpop.sfrf %805 }
 0x3e1   :  { %p1053_p3 = scmp.ne.s32.totalorder %s806_s2, 0 }
 0x3e3   :  { %810 = shalt.err (%p1053_p3)  }
 0x3e4   :  { %812 = vsyncmov [#allocation3 + $0xe] }
 0x3e7   :  { %s813_s25 = vpop.sfrf %812 }
 0x3e8   :  { %p1054_p13 = scmp.ne.s32.totalorder %s813_s25, 0 }
 0x3ea   :  { %817 = shalt.err (%p1054_p13)  }
 0x3eb   :  { %819 = vsyncmov [#allocation3 + $0xf] }
 0x3ee   :  { %s820_s29 = vpop.sfrf %819 }
 0x3ef   :  { %p1055_p11 = scmp.ne.s32.totalorder %s820_s29, 0 }
 0x3f1   :  { %824 = shalt.err (%p1055_p11)  }

</bundles_post_ra>
